<compile_context>
chip_gen: v5e
topology: v5e:2x2
jax: 0.10.0
libtpu: 0.0.40
codegen_flags: <defaults>
</compile_context>

<pallas_src>
import functools

import jax
import jax.numpy as jnp
from jax.experimental import pallas as pl
from jax.experimental.pallas import tpu as pltpu

# ----------------------------- model config ---------------------------------
BATCH = 2
SEQ = 8
HIDDEN = 32          # small stand-in for num_hidden=768
NUM_HEADS = 4
HEAD_DIM = HIDDEN // NUM_HEADS
FFN = 64
NUM_LAYERS = 2       # small stand-in for DistilBERT's 6 layers
VOCAB = 50
MAX_POS = 16
NUM_OUTPUT = 57      # matches LMClassifier default num_output
OUT_PAD = 128        # lane-dense padded classifier width (sliced back to 57)


def _layer_norm(x, gamma, beta, eps=1e-12):
    mu = jnp.mean(x, axis=-1, keepdims=True)
    var = jnp.mean((x - mu) ** 2, axis=-1, keepdims=True)
    return (x - mu) * jax.lax.rsqrt(var + eps) * gamma + beta


def _gelu(x):
    # tanh-approx GELU (maps onto the EUP; synthetic weights so exact-erf
    # DistilBERT GELU is not required).
    c = 0.7978845608028654  # sqrt(2/pi)
    return 0.5 * x * (1.0 + jnp.tanh(c * (x + 0.044715 * x * x * x)))


# ------------- Pallas kernel: full encoder stack + classifier head -----------
def encoder_classifier_kernel(x_ref, mask_ref,
                              wq_ref, bq_ref, wk_ref, bk_ref, wv_ref, bv_ref,
                              wo_ref, bo_ref, ln1_g_ref, ln1_b_ref,
                              w1_ref, b1_ref, w2_ref, b2_ref,
                              ln2_g_ref, ln2_b_ref,
                              cls_w_ref, cls_b_ref,
                              logits_ref,
                              x_scratch,
                              *, num_heads, head_dim):
    layer = pl.program_id(1)
    n_layers = pl.num_programs(1)

    # Layer 0: pull this batch row's embedding output into the VMEM carry.
    @pl.when(layer == 0)
    def _():
        x_scratch[...] = x_ref[...].astype(jnp.float32)

    x = x_scratch[...]                                       # (S, H) f32 residual
    neg = (1.0 - mask_ref[...].astype(jnp.float32)) * -1e9   # (1, S) key mask

    # ---------------- multi-head self-attention -----------------------------
    # Full-width fused projections (head-major columns), bf16 in / f32 accum.
    # 1/sqrt(head_dim) is pre-folded into wq/bq at weight-prep time.
    xb = x.astype(jnp.bfloat16)
    q = jnp.dot(xb, wq_ref[...], preferred_element_type=jnp.float32) + bq_ref[...]
    k = jnp.dot(xb, wk_ref[...], preferred_element_type=jnp.float32) + bk_ref[...]
    v = jnp.dot(xb, wv_ref[...], preferred_element_type=jnp.float32) + bv_ref[...]

    ctx_heads = []
    for h in range(num_heads):      # static unroll; scores are per-head by nature
        sl = slice(h * head_dim, (h + 1) * head_dim)
        qh = q[:, sl].astype(jnp.bfloat16)
        kh = k[:, sl].astype(jnp.bfloat16)
        vh = v[:, sl].astype(jnp.bfloat16)
        s = jax.lax.dot_general(qh, kh, (((1,), (1,)), ((), ())),
                                preferred_element_type=jnp.float32)   # (S, S)
        s = s + neg
        m = jnp.max(s, axis=-1, keepdims=True)
        p = jnp.exp(s - m)
        p = p / jnp.sum(p, axis=-1, keepdims=True)
        ctx_heads.append(jnp.dot(p.astype(jnp.bfloat16), vh,
                                 preferred_element_type=jnp.float32))  # (S, dh)
    ctx = jnp.concatenate(ctx_heads, axis=-1)                # (S, H) head-major
    attn = jnp.dot(ctx.astype(jnp.bfloat16), wo_ref[...],
                   preferred_element_type=jnp.float32) + bo_ref[...]

    # ---------------- add&norm, FFN, add&norm (f32 elementwise) -------------
    h1 = _layer_norm(x + attn, ln1_g_ref[...], ln1_b_ref[...])
    ff = _gelu(jnp.dot(h1.astype(jnp.bfloat16), w1_ref[...],
                       preferred_element_type=jnp.float32) + b1_ref[...])
    ff = jnp.dot(ff.astype(jnp.bfloat16), w2_ref[...],
                 preferred_element_type=jnp.float32) + b2_ref[...]
    out = _layer_norm(h1 + ff, ln2_g_ref[...], ln2_b_ref[...])
    x_scratch[...] = out

    # ---------------- last layer: CLS pool + dropout(id) + classifier -------
    @pl.when(layer == n_layers - 1)
    def _():
        pooled = out[0:1, :]                     # pooler = hidden_state[:, 0, :]
        # TODO(synk): nn.Dropout(0.1) is identity here (inference semantics).
        logits = jnp.dot(pooled, cls_w_ref[...],
                         preferred_element_type=jnp.float32) + cls_b_ref[...]
        logits_ref[...] = logits.astype(logits_ref.dtype)    # lane-dense (1, 128)


_STACKED_ORDER = ("wq", "bq", "wk", "bk", "wv", "bv", "wo", "bo",
                  "ln1_g", "ln1_b", "w1", "b1", "w2", "b2",
                  "ln2_g", "ln2_b")


# ------------------------------ weight preparation ---------------------------
def prepare_pallas_params(params):
    """Stack per-layer weights along a leading layer axis, fuse per-head
    projections into full-width (H, H) matrices (head-major columns), fold the
    1/sqrt(head_dim) scale into Wq/bq, cast MXU operands to bf16, and pad the
    classifier to a lane-dense 128-wide output."""
    scale = 1.0 / (HEAD_DIM ** 0.5)

    def fuse_w(w):   # (nh, H, dh) -> (H, nh*dh), head-major columns
        return jnp.transpose(w, (1, 0, 2)).reshape(HIDDEN, HIDDEN)

    def fuse_b(b):   # (nh, 1, dh) -> (1, nh*dh)
        return b.reshape(1, HIDDEN)

    layers = params["layers"]
    stack = lambda f: jnp.stack([f(p) for p in layers], axis=0)

    prepared = dict(
        wq=stack(lambda p: (fuse_w(p["wq"]) * scale).astype(jnp.bfloat16)),
        bq=stack(lambda p: fuse_b(p["bq"]) * scale),
        wk=stack(lambda p: fuse_w(p["wk"]).astype(jnp.bfloat16)),
        bk=stack(lambda p: fuse_b(p["bk"])),
        wv=stack(lambda p: fuse_w(p["wv"]).astype(jnp.bfloat16)),
        bv=stack(lambda p: fuse_b(p["bv"])),
        wo=stack(lambda p: p["wo"].reshape(HIDDEN, HIDDEN).astype(jnp.bfloat16)),
        bo=stack(lambda p: p["bo"]),
        ln1_g=stack(lambda p: p["ln1_g"]),
        ln1_b=stack(lambda p: p["ln1_b"]),
        w1=stack(lambda p: p["w1"].astype(jnp.bfloat16)),
        b1=stack(lambda p: p["b1"]),
        w2=stack(lambda p: p["w2"].astype(jnp.bfloat16)),
        b2=stack(lambda p: p["b2"]),
        ln2_g=stack(lambda p: p["ln2_g"]),
        ln2_b=stack(lambda p: p["ln2_b"]),
    )
    prepared["cls_w"] = jnp.zeros((HIDDEN, OUT_PAD), jnp.float32
                                  ).at[:, :NUM_OUTPUT].set(params["cls_w"])
    prepared["cls_b"] = jnp.zeros((1, OUT_PAD), jnp.float32
                                  ).at[:, :NUM_OUTPUT].set(params["cls_b"])
    return prepared


# ------------------------------ glue (plain JAX) -----------------------------
def embed(input_ids, params):
    # TODO(synk): AutoModel.from_pretrained('distilbert-base-uncased') weights
    # cannot be loaded here; embeddings + encoder weights are synthetic, and the
    # embedding gather stays in plain-JAX glue.
    S = input_ids.shape[1]
    we = params["word_emb"][input_ids]            # (B, S, H)
    pe = params["pos_emb"][None, :S, :]           # (1, S, H)
    return _layer_norm(we + pe, params["emb_ln_g"], params["emb_ln_b"])


def lm_classifier_forward(input_ids, attention_mask, params, prepared):
    x = embed(input_ids, params)                                # (B, S, H) f32
    mask3 = attention_mask.astype(jnp.float32)[:, None, :]      # (B, 1, S)
    B, S, H = x.shape

    def layer_spec(a):   # stacked (L, ...) weight: one layer's slab per grid step
        return pl.BlockSpec((pl.Squeezed(),) + a.shape[1:],
                            lambda b, l: (l,) + (0,) * (a.ndim - 1))

    def resident(a):     # constant across the whole grid (classifier weights)
        return pl.BlockSpec(a.shape, lambda b, l: (0,) * a.ndim)

    weights = [prepared[k] for k in _STACKED_ORDER]
    in_specs = (
        [pl.BlockSpec((pl.Squeezed(), S, H), lambda b, l: (b, 0, 0)),
         pl.BlockSpec((pl.Squeezed(), 1, S), lambda b, l: (b, 0, 0))]
        + [layer_spec(w) for w in weights]
        + [resident(prepared["cls_w"]), resident(prepared["cls_b"])])
    out_spec = pl.BlockSpec((pl.Squeezed(), 1, OUT_PAD), lambda b, l: (b, 0, 0))

    kernel = functools.partial(encoder_classifier_kernel,
                               num_heads=NUM_HEADS, head_dim=HEAD_DIM)
    logits_pad = pl.pallas_call(
        kernel,
        out_shape=jax.ShapeDtypeStruct((B, 1, OUT_PAD), jnp.float32),
        grid=(B, NUM_LAYERS),
        in_specs=in_specs,
        out_specs=out_spec,
        scratch_shapes=[pltpu.VMEM((S, H), jnp.float32)],   # residual-stream carry
        compiler_params=pltpu.CompilerParams(
            dimension_semantics=("parallel", "arbitrary"),
            vmem_limit_bytes=48 * 1024 * 1024),
    )(x, mask3, *weights, prepared["cls_w"], prepared["cls_b"])
    return logits_pad[:, 0, :NUM_OUTPUT]


# ------------------------------ reference (jnp, f32) -------------------------
def reference_forward(input_ids, attention_mask, params):
    x = embed(input_ids, params)
    mask = attention_mask.astype(jnp.float32)
    neg = (1.0 - mask)[:, None, :] * -1e9
    scale = 1.0 / (HEAD_DIM ** 0.5)
    for p in params["layers"]:
        attn = jnp.zeros_like(x)
        for h in range(NUM_HEADS):
            q = jnp.einsum('bsh,hd->bsd', x, p["wq"][h]) + p["bq"][h]
            k = jnp.einsum('bsh,hd->bsd', x, p["wk"][h]) + p["bk"][h]
            v = jnp.einsum('bsh,hd->bsd', x, p["wv"][h]) + p["bv"][h]
            s = jnp.einsum('bqd,bkd->bqk', q, k) * scale + neg
            pr = jax.nn.softmax(s, axis=-1)
            ctx = jnp.einsum('bqk,bkd->bqd', pr, v)
            attn = attn + jnp.einsum('bqd,dh->bqh', ctx, p["wo"][h])
        attn = attn + p["bo"]
        h1 = _layer_norm(x + attn, p["ln1_g"], p["ln1_b"])
        ff = _gelu(jnp.einsum('bsh,hf->bsf', h1, p["w1"]) + p["b1"])
        ff = jnp.einsum('bsf,fh->bsh', ff, p["w2"]) + p["b2"]
        x = _layer_norm(h1 + ff, p["ln2_g"], p["ln2_b"])
    pooled = x[:, 0, :]
    return pooled @ params["cls_w"] + params["cls_b"]


# ------------------------------ deterministic init ---------------------------
def init_params(key):
    def normal(k, shape):
        return 0.02 * jax.random.normal(k, shape, jnp.float32)

    k_word, k_pos, k_cls, k_layers = jax.random.split(key, 4)
    params = {
        "word_emb": normal(k_word, (VOCAB, HIDDEN)),
        "pos_emb":  normal(k_pos, (MAX_POS, HIDDEN)),
        "emb_ln_g": jnp.ones((1, HIDDEN), jnp.float32),
        "emb_ln_b": jnp.zeros((1, HIDDEN), jnp.float32),
        "cls_w":    normal(k_cls, (HIDDEN, NUM_OUTPUT)),
        "cls_b":    jnp.zeros((1, NUM_OUTPUT), jnp.float32),
        "layers":   [],
    }
    for lk in jax.random.split(k_layers, NUM_LAYERS):
        ks = jax.random.split(lk, 6)
        params["layers"].append({
            "wq": normal(ks[0], (NUM_HEADS, HIDDEN, HEAD_DIM)),
            "bq": jnp.zeros((NUM_HEADS, 1, HEAD_DIM), jnp.float32),
            "wk": normal(ks[1], (NUM_HEADS, HIDDEN, HEAD_DIM)),
            "bk": jnp.zeros((NUM_HEADS, 1, HEAD_DIM), jnp.float32),
            "wv": normal(ks[2], (NUM_HEADS, HIDDEN, HEAD_DIM)),
            "bv": jnp.zeros((NUM_HEADS, 1, HEAD_DIM), jnp.float32),
            "wo": normal(ks[3], (NUM_HEADS, HEAD_DIM, HIDDEN)),
            "bo": jnp.zeros((1, HIDDEN), jnp.float32),
            "ln1_g": jnp.ones((1, HIDDEN), jnp.float32),
            "ln1_b": jnp.zeros((1, HIDDEN), jnp.float32),
            "w1": normal(ks[4], (HIDDEN, FFN)),
            "b1": jnp.zeros((1, FFN), jnp.float32),
            "w2": normal(ks[5], (FFN, HIDDEN)),
            "b2": jnp.zeros((1, HIDDEN), jnp.float32),
            "ln2_g": jnp.ones((1, HIDDEN), jnp.float32),
            "ln2_b": jnp.zeros((1, HIDDEN), jnp.float32),
        })
    return params


if __name__ == "__main__":
    key = jax.random.PRNGKey(0)
    k_ids, k_params = jax.random.split(key)
    input_ids = jax.random.randint(k_ids, (BATCH, SEQ), 0, VOCAB, dtype=jnp.int32)
    attention_mask = jnp.array([[1] * SEQ, [1] * 6 + [0] * 2], dtype=jnp.int32)
    params = init_params(k_params)
    prepared = prepare_pallas_params(params)   # cast/fuse weights once

    logits = lm_classifier_forward(input_ids, attention_mask, params, prepared)
    logits = jax.block_until_ready(logits)
    assert logits.shape == (BATCH, NUM_OUTPUT), logits.shape

    # f32 reference; tolerance slightly loosened for bf16 MXU inputs (f32 accum).
    ref = reference_forward(input_ids, attention_mask, params)
    assert jnp.allclose(logits, ref, rtol=2e-2, atol=2e-3), (
        f"max abs diff {jnp.max(jnp.abs(logits - ref))}")

    print("KERNEL_OK")
</pallas_src>

<mosaic_0001>
module attributes {stable_mosaic.version = 11 : i64} {
  func.func @encoder_classifier_kernel(%arg0: i32, %arg1: i32, %arg2: memref<1x8x32xf32, #tpu.memory_space<vmem>>, %arg3: memref<1x1x8xf32, #tpu.memory_space<vmem>>, %arg4: memref<1x32x32xbf16, #tpu.memory_space<vmem>>, %arg5: memref<1x1x32xf32, #tpu.memory_space<vmem>>, %arg6: memref<1x32x32xbf16, #tpu.memory_space<vmem>>, %arg7: memref<1x1x32xf32, #tpu.memory_space<vmem>>, %arg8: memref<1x32x32xbf16, #tpu.memory_space<vmem>>, %arg9: memref<1x1x32xf32, #tpu.memory_space<vmem>>, %arg10: memref<1x32x32xbf16, #tpu.memory_space<vmem>>, %arg11: memref<1x1x32xf32, #tpu.memory_space<vmem>>, %arg12: memref<1x1x32xf32, #tpu.memory_space<vmem>>, %arg13: memref<1x1x32xf32, #tpu.memory_space<vmem>>, %arg14: memref<1x32x64xbf16, #tpu.memory_space<vmem>>, %arg15: memref<1x1x64xf32, #tpu.memory_space<vmem>>, %arg16: memref<1x64x32xbf16, #tpu.memory_space<vmem>>, %arg17: memref<1x1x32xf32, #tpu.memory_space<vmem>>, %arg18: memref<1x1x32xf32, #tpu.memory_space<vmem>>, %arg19: memref<1x1x32xf32, #tpu.memory_space<vmem>>, %arg20: memref<32x128xf32, #tpu.memory_space<vmem>>, %arg21: memref<1x128xf32, #tpu.memory_space<vmem>>, %arg22: memref<1x1x128xf32, #tpu.memory_space<vmem>>, %arg23: memref<8x32xf32, #tpu.memory_space<vmem>>) attributes {dimension_semantics = [#tpu.dimension_semantics<parallel>, #tpu.dimension_semantics<arbitrary>], iteration_bounds = array<i64: 2, 2>, scalar_prefetch = 0 : i64, scratch_operands = 1 : i64, tpu.core_type = #tpu.core_type<tc>, window_params = [{transform_indices = @transform_0, window_bounds = array<i64: 1, 8, 32>}, {transform_indices = @transform_1, window_bounds = array<i64: 1, 1, 8>}, {transform_indices = @transform_2, window_bounds = array<i64: 1, 32, 32>}, {transform_indices = @transform_3, window_bounds = array<i64: 1, 1, 32>}, {transform_indices = @transform_4, window_bounds = array<i64: 1, 32, 32>}, {transform_indices = @transform_5, window_bounds = array<i64: 1, 1, 32>}, {transform_indices = @transform_6, window_bounds = array<i64: 1, 32, 32>}, {transform_indices = @transform_7, window_bounds = array<i64: 1, 1, 32>}, {transform_indices = @transform_8, window_bounds = array<i64: 1, 32, 32>}, {transform_indices = @transform_9, window_bounds = array<i64: 1, 1, 32>}, {transform_indices = @transform_10, window_bounds = array<i64: 1, 1, 32>}, {transform_indices = @transform_11, window_bounds = array<i64: 1, 1, 32>}, {transform_indices = @transform_12, window_bounds = array<i64: 1, 32, 64>}, {transform_indices = @transform_13, window_bounds = array<i64: 1, 1, 64>}, {transform_indices = @transform_14, window_bounds = array<i64: 1, 64, 32>}, {transform_indices = @transform_15, window_bounds = array<i64: 1, 1, 32>}, {transform_indices = @transform_16, window_bounds = array<i64: 1, 1, 32>}, {transform_indices = @transform_17, window_bounds = array<i64: 1, 1, 32>}, {pipeline_mode = #tpu.pipeline_mode<synchronous>, transform_indices = @transform_18, window_bounds = array<i64: 32, 128>}, {pipeline_mode = #tpu.pipeline_mode<synchronous>, transform_indices = @transform_19, window_bounds = array<i64: 1, 128>}, {transform_indices = @transform_20, window_bounds = array<i64: 1, 1, 128>}]} {
    %c0_i32 = arith.constant 0 : i32
    %0 = arith.cmpi eq, %arg1, %c0_i32 : i32
    %1 = arith.extui %0 : i1 to i32
    %c0_i32_0 = arith.constant 0 : i32
    %2 = arith.cmpi ne, %1, %c0_i32_0 : i32
    scf.if %2 {
      %c0_93 = arith.constant 0 : index
      %c0_94 = arith.constant 0 : index
      %c0_95 = arith.constant 0 : index
      %208 = vector.load %arg2[%c0_93, %c0_94, %c0_95] : memref<1x8x32xf32, #tpu.memory_space<vmem>>, vector<1x8x32xf32>
      %209 = vector.shape_cast %208 : vector<1x8x32xf32> to vector<8x32xf32>
      %c0_96 = arith.constant 0 : index
      %c0_97 = arith.constant 0 : index
      %210 = vector.load %arg23[%c0_96, %c0_97] : memref<8x32xf32, #tpu.memory_space<vmem>>, vector<8x32xf32>
      tpu.vector_store %arg23[%c0_96, %c0_97], %209 {strides = array<i32>} : memref<8x32xf32, #tpu.memory_space<vmem>>, vector<8x32xf32>,
    } else {
    }
    %c0 = arith.constant 0 : index
    %c0_1 = arith.constant 0 : index
    %3 = vector.load %arg23[%c0, %c0_1] : memref<8x32xf32, #tpu.memory_space<vmem>>, vector<8x32xf32>
    %c0_2 = arith.constant 0 : index
    %c0_3 = arith.constant 0 : index
    %c0_4 = arith.constant 0 : index
    %4 = vector.load %arg3[%c0_2, %c0_3, %c0_4] : memref<1x1x8xf32, #tpu.memory_space<vmem>>, vector<1x1x8xf32>
    %5 = vector.shape_cast %4 : vector<1x1x8xf32> to vector<1x8xf32>
    %cst = arith.constant 1.000000e+00 : f32
    %6 = vector.broadcast %cst : f32 to vector<1x8xf32>
    %7 = arith.subf %6, %5 : vector<1x8xf32>
    %cst_5 = arith.constant -1.000000e+09 : f32
    %8 = vector.broadcast %cst_5 : f32 to vector<1x8xf32>
    %9 = arith.mulf %7, %8 : vector<1x8xf32>
    %10 = arith.truncf %3 : vector<8x32xf32> to vector<8x32xbf16>
    %c0_6 = arith.constant 0 : index
    %c0_7 = arith.constant 0 : index
    %c0_8 = arith.constant 0 : index
    %11 = vector.load %arg4[%c0_6, %c0_7, %c0_8] : memref<1x32x32xbf16, #tpu.memory_space<vmem>>, vector<1x32x32xbf16>
    %12 = vector.shape_cast %11 : vector<1x32x32xbf16> to vector<32x32xbf16>
    %cst_9 = arith.constant dense<0.000000e+00> : vector<8x32xf32>
    %13 = tpu.matmul %10, %12, %cst_9 {dimension_numbers = #tpu.dot_dimension_numbers<[1], [0], [0], [1], [0, 0, 1, 1], [], []>} : vector<8x32xbf16>, vector<32x32xbf16>, vector<8x32xf32> -> vector<8x32xf32>
    %c0_10 = arith.constant 0 : index
    %c0_11 = arith.constant 0 : index
    %c0_12 = arith.constant 0 : index
    %14 = vector.load %arg5[%c0_10, %c0_11, %c0_12] : memref<1x1x32xf32, #tpu.memory_space<vmem>>, vector<1x1x32xf32>
    %15 = vector.shape_cast %14 : vector<1x1x32xf32> to vector<1x32xf32>
    %16 = vector.broadcast %15 : vector<1x32xf32> to vector<8x32xf32>
    %17 = arith.addf %13, %16 : vector<8x32xf32>
    %c0_13 = arith.constant 0 : index
    %c0_14 = arith.constant 0 : index
    %c0_15 = arith.constant 0 : index
    %18 = vector.load %arg6[%c0_13, %c0_14, %c0_15] : memref<1x32x32xbf16, #tpu.memory_space<vmem>>, vector<1x32x32xbf16>
    %19 = vector.shape_cast %18 : vector<1x32x32xbf16> to vector<32x32xbf16>
    %cst_16 = arith.constant dense<0.000000e+00> : vector<8x32xf32>
    %20 = tpu.matmul %10, %19, %cst_16 {dimension_numbers = #tpu.dot_dimension_numbers<[1], [0], [0], [1], [0, 0, 1, 1], [], []>} : vector<8x32xbf16>, vector<32x32xbf16>, vector<8x32xf32> -> vector<8x32xf32>
    %c0_17 = arith.constant 0 : index
    %c0_18 = arith.constant 0 : index
    %c0_19 = arith.constant 0 : index
    %21 = vector.load %arg7[%c0_17, %c0_18, %c0_19] : memref<1x1x32xf32, #tpu.memory_space<vmem>>, vector<1x1x32xf32>
    %22 = vector.shape_cast %21 : vector<1x1x32xf32> to vector<1x32xf32>
    %23 = vector.broadcast %22 : vector<1x32xf32> to vector<8x32xf32>
    %24 = arith.addf %20, %23 : vector<8x32xf32>
    %c0_20 = arith.constant 0 : index
    %c0_21 = arith.constant 0 : index
    %c0_22 = arith.constant 0 : index
    %25 = vector.load %arg8[%c0_20, %c0_21, %c0_22] : memref<1x32x32xbf16, #tpu.memory_space<vmem>>, vector<1x32x32xbf16>
    %26 = vector.shape_cast %25 : vector<1x32x32xbf16> to vector<32x32xbf16>
    %cst_23 = arith.constant dense<0.000000e+00> : vector<8x32xf32>
    %27 = tpu.matmul %10, %26, %cst_23 {dimension_numbers = #tpu.dot_dimension_numbers<[1], [0], [0], [1], [0, 0, 1, 1], [], []>} : vector<8x32xbf16>, vector<32x32xbf16>, vector<8x32xf32> -> vector<8x32xf32>
    %c0_24 = arith.constant 0 : index
    %c0_25 = arith.constant 0 : index
    %c0_26 = arith.constant 0 : index
    %28 = vector.load %arg9[%c0_24, %c0_25, %c0_26] : memref<1x1x32xf32, #tpu.memory_space<vmem>>, vector<1x1x32xf32>
    %29 = vector.shape_cast %28 : vector<1x1x32xf32> to vector<1x32xf32>
    %30 = vector.broadcast %29 : vector<1x32xf32> to vector<8x32xf32>
    %31 = arith.addf %27, %30 : vector<8x32xf32>
    %32 = vector.extract_strided_slice %17 {offsets = [0, 0], sizes = [8, 8], strides = [1, 1]} : vector<8x32xf32> to vector<8x8xf32>
    %33 = arith.truncf %32 : vector<8x8xf32> to vector<8x8xbf16>
    %34 = vector.extract_strided_slice %24 {offsets = [0, 0], sizes = [8, 8], strides = [1, 1]} : vector<8x32xf32> to vector<8x8xf32>
    %35 = arith.truncf %34 : vector<8x8xf32> to vector<8x8xbf16>
    %36 = vector.extract_strided_slice %31 {offsets = [0, 0], sizes = [8, 8], strides = [1, 1]} : vector<8x32xf32> to vector<8x8xf32>
    %37 = arith.truncf %36 : vector<8x8xf32> to vector<8x8xbf16>
    %cst_27 = arith.constant dense<0.000000e+00> : vector<8x8xf32>
    %38 = tpu.matmul %33, %35, %cst_27 {dimension_numbers = #tpu.dot_dimension_numbers<[1], [1], [0], [0], [0, 0, 1, 0], [], []>} : vector<8x8xbf16>, vector<8x8xbf16>, vector<8x8xf32> -> vector<8x8xf32>
    %39 = vector.broadcast %9 : vector<1x8xf32> to vector<8x8xf32>
    %40 = arith.addf %38, %39 : vector<8x8xf32>
    %cst_28 = arith.constant dense<0xFF800000> : vector<8xf32>
    %41 = vector.multi_reduction <maximumf>, %40, %cst_28 [1] : vector<8x8xf32> to vector<8xf32>
    %42 = vector.shape_cast %41 : vector<8xf32> to vector<8x1xf32>
    %43 = vector.broadcast %42 : vector<8x1xf32> to vector<8x8xf32>
    %44 = arith.subf %40, %43 : vector<8x8xf32>
    %45 = math.exp %44 : vector<8x8xf32>
    %cst_29 = arith.constant dense<0.000000e+00> : vector<8xf32>
    %46 = vector.multi_reduction <add>, %45, %cst_29 [1] : vector<8x8xf32> to vector<8xf32>
    %47 = vector.shape_cast %46 : vector<8xf32> to vector<8x1xf32>
    %48 = vector.broadcast %47 : vector<8x1xf32> to vector<8x8xf32>
    %49 = arith.divf %45, %48 : vector<8x8xf32>
    %50 = arith.truncf %49 : vector<8x8xf32> to vector<8x8xbf16>
    %cst_30 = arith.constant dense<0.000000e+00> : vector<8x8xf32>
    %51 = tpu.matmul %50, %37, %cst_30 {dimension_numbers = #tpu.dot_dimension_numbers<[1], [0], [0], [1], [0, 0, 1, 1], [], []>} : vector<8x8xbf16>, vector<8x8xbf16>, vector<8x8xf32> -> vector<8x8xf32>
    %52 = vector.extract_strided_slice %17 {offsets = [0, 8], sizes = [8, 8], strides = [1, 1]} : vector<8x32xf32> to vector<8x8xf32>
    %53 = arith.truncf %52 : vector<8x8xf32> to vector<8x8xbf16>
    %54 = vector.extract_strided_slice %24 {offsets = [0, 8], sizes = [8, 8], strides = [1, 1]} : vector<8x32xf32> to vector<8x8xf32>
    %55 = arith.truncf %54 : vector<8x8xf32> to vector<8x8xbf16>
    %56 = vector.extract_strided_slice %31 {offsets = [0, 8], sizes = [8, 8], strides = [1, 1]} : vector<8x32xf32> to vector<8x8xf32>
    %57 = arith.truncf %56 : vector<8x8xf32> to vector<8x8xbf16>
    %cst_31 = arith.constant dense<0.000000e+00> : vector<8x8xf32>
    %58 = tpu.matmul %53, %55, %cst_31 {dimension_numbers = #tpu.dot_dimension_numbers<[1], [1], [0], [0], [0, 0, 1, 0], [], []>} : vector<8x8xbf16>, vector<8x8xbf16>, vector<8x8xf32> -> vector<8x8xf32>
    %59 = vector.broadcast %9 : vector<1x8xf32> to vector<8x8xf32>
    %60 = arith.addf %58, %59 : vector<8x8xf32>
    %cst_32 = arith.constant dense<0xFF800000> : vector<8xf32>
    %61 = vector.multi_reduction <maximumf>, %60, %cst_32 [1] : vector<8x8xf32> to vector<8xf32>
    %62 = vector.shape_cast %61 : vector<8xf32> to vector<8x1xf32>
    %63 = vector.broadcast %62 : vector<8x1xf32> to vector<8x8xf32>
    %64 = arith.subf %60, %63 : vector<8x8xf32>
    %65 = math.exp %64 : vector<8x8xf32>
    %cst_33 = arith.constant dense<0.000000e+00> : vector<8xf32>
    %66 = vector.multi_reduction <add>, %65, %cst_33 [1] : vector<8x8xf32> to vector<8xf32>
    %67 = vector.shape_cast %66 : vector<8xf32> to vector<8x1xf32>
    %68 = vector.broadcast %67 : vector<8x1xf32> to vector<8x8xf32>
    %69 = arith.divf %65, %68 : vector<8x8xf32>
    %70 = arith.truncf %69 : vector<8x8xf32> to vector<8x8xbf16>
    %cst_34 = arith.constant dense<0.000000e+00> : vector<8x8xf32>
    %71 = tpu.matmul %70, %57, %cst_34 {dimension_numbers = #tpu.dot_dimension_numbers<[1], [0], [0], [1], [0, 0, 1, 1], [], []>} : vector<8x8xbf16>, vector<8x8xbf16>, vector<8x8xf32> -> vector<8x8xf32>
    %72 = vector.extract_strided_slice %17 {offsets = [0, 16], sizes = [8, 8], strides = [1, 1]} : vector<8x32xf32> to vector<8x8xf32>
    %73 = arith.truncf %72 : vector<8x8xf32> to vector<8x8xbf16>
    %74 = vector.extract_strided_slice %24 {offsets = [0, 16], sizes = [8, 8], strides = [1, 1]} : vector<8x32xf32> to vector<8x8xf32>
    %75 = arith.truncf %74 : vector<8x8xf32> to vector<8x8xbf16>
    %76 = vector.extract_strided_slice %31 {offsets = [0, 16], sizes = [8, 8], strides = [1, 1]} : vector<8x32xf32> to vector<8x8xf32>
    %77 = arith.truncf %76 : vector<8x8xf32> to vector<8x8xbf16>
    %cst_35 = arith.constant dense<0.000000e+00> : vector<8x8xf32>
    %78 = tpu.matmul %73, %75, %cst_35 {dimension_numbers = #tpu.dot_dimension_numbers<[1], [1], [0], [0], [0, 0, 1, 0], [], []>} : vector<8x8xbf16>, vector<8x8xbf16>, vector<8x8xf32> -> vector<8x8xf32>
    %79 = vector.broadcast %9 : vector<1x8xf32> to vector<8x8xf32>
    %80 = arith.addf %78, %79 : vector<8x8xf32>
    %cst_36 = arith.constant dense<0xFF800000> : vector<8xf32>
    %81 = vector.multi_reduction <maximumf>, %80, %cst_36 [1] : vector<8x8xf32> to vector<8xf32>
    %82 = vector.shape_cast %81 : vector<8xf32> to vector<8x1xf32>
    %83 = vector.broadcast %82 : vector<8x1xf32> to vector<8x8xf32>
    %84 = arith.subf %80, %83 : vector<8x8xf32>
    %85 = math.exp %84 : vector<8x8xf32>
    %cst_37 = arith.constant dense<0.000000e+00> : vector<8xf32>
    %86 = vector.multi_reduction <add>, %85, %cst_37 [1] : vector<8x8xf32> to vector<8xf32>
    %87 = vector.shape_cast %86 : vector<8xf32> to vector<8x1xf32>
    %88 = vector.broadcast %87 : vector<8x1xf32> to vector<8x8xf32>
    %89 = arith.divf %85, %88 : vector<8x8xf32>
    %90 = arith.truncf %89 : vector<8x8xf32> to vector<8x8xbf16>
    %cst_38 = arith.constant dense<0.000000e+00> : vector<8x8xf32>
    %91 = tpu.matmul %90, %77, %cst_38 {dimension_numbers = #tpu.dot_dimension_numbers<[1], [0], [0], [1], [0, 0, 1, 1], [], []>} : vector<8x8xbf16>, vector<8x8xbf16>, vector<8x8xf32> -> vector<8x8xf32>
    %92 = vector.extract_strided_slice %17 {offsets = [0, 24], sizes = [8, 8], strides = [1, 1]} : vector<8x32xf32> to vector<8x8xf32>
    %93 = arith.truncf %92 : vector<8x8xf32> to vector<8x8xbf16>
    %94 = vector.extract_strided_slice %24 {offsets = [0, 24], sizes = [8, 8], strides = [1, 1]} : vector<8x32xf32> to vector<8x8xf32>
    %95 = arith.truncf %94 : vector<8x8xf32> to vector<8x8xbf16>
    %96 = vector.extract_strided_slice %31 {offsets = [0, 24], sizes = [8, 8], strides = [1, 1]} : vector<8x32xf32> to vector<8x8xf32>
    %97 = arith.truncf %96 : vector<8x8xf32> to vector<8x8xbf16>
    %cst_39 = arith.constant dense<0.000000e+00> : vector<8x8xf32>
    %98 = tpu.matmul %93, %95, %cst_39 {dimension_numbers = #tpu.dot_dimension_numbers<[1], [1], [0], [0], [0, 0, 1, 0], [], []>} : vector<8x8xbf16>, vector<8x8xbf16>, vector<8x8xf32> -> vector<8x8xf32>
    %99 = vector.broadcast %9 : vector<1x8xf32> to vector<8x8xf32>
    %100 = arith.addf %98, %99 : vector<8x8xf32>
    %cst_40 = arith.constant dense<0xFF800000> : vector<8xf32>
    %101 = vector.multi_reduction <maximumf>, %100, %cst_40 [1] : vector<8x8xf32> to vector<8xf32>
    %102 = vector.shape_cast %101 : vector<8xf32> to vector<8x1xf32>
    %103 = vector.broadcast %102 : vector<8x1xf32> to vector<8x8xf32>
    %104 = arith.subf %100, %103 : vector<8x8xf32>
    %105 = math.exp %104 : vector<8x8xf32>
    %cst_41 = arith.constant dense<0.000000e+00> : vector<8xf32>
    %106 = vector.multi_reduction <add>, %105, %cst_41 [1] : vector<8x8xf32> to vector<8xf32>
    %107 = vector.shape_cast %106 : vector<8xf32> to vector<8x1xf32>
    %108 = vector.broadcast %107 : vector<8x1xf32> to vector<8x8xf32>
    %109 = arith.divf %105, %108 : vector<8x8xf32>
    %110 = arith.truncf %109 : vector<8x8xf32> to vector<8x8xbf16>
    %cst_42 = arith.constant dense<0.000000e+00> : vector<8x8xf32>
    %111 = tpu.matmul %110, %97, %cst_42 {dimension_numbers = #tpu.dot_dimension_numbers<[1], [0], [0], [1], [0, 0, 1, 1], [], []>} : vector<8x8xbf16>, vector<8x8xbf16>, vector<8x8xf32> -> vector<8x8xf32>
    %112 = tpu.concatenate %51, %71, %91, %111 in 1 : vector<8x8xf32>, vector<8x8xf32>, vector<8x8xf32>, vector<8x8xf32> -> vector<8x32xf32>
    %113 = arith.truncf %112 : vector<8x32xf32> to vector<8x32xbf16>
    %c0_43 = arith.constant 0 : index
    %c0_44 = arith.constant 0 : index
    %c0_45 = arith.constant 0 : index
    %114 = vector.load %arg10[%c0_43, %c0_44, %c0_45] : memref<1x32x32xbf16, #tpu.memory_space<vmem>>, vector<1x32x32xbf16>
    %115 = vector.shape_cast %114 : vector<1x32x32xbf16> to vector<32x32xbf16>
    %cst_46 = arith.constant dense<0.000000e+00> : vector<8x32xf32>
    %116 = tpu.matmul %113, %115, %cst_46 {dimension_numbers = #tpu.dot_dimension_numbers<[1], [0], [0], [1], [0, 0, 1, 1], [], []>} : vector<8x32xbf16>, vector<32x32xbf16>, vector<8x32xf32> -> vector<8x32xf32>
    %c0_47 = arith.constant 0 : index
    %c0_48 = arith.constant 0 : index
    %c0_49 = arith.constant 0 : index
    %117 = vector.load %arg11[%c0_47, %c0_48, %c0_49] : memref<1x1x32xf32, #tpu.memory_space<vmem>>, vector<1x1x32xf32>
    %118 = vector.shape_cast %117 : vector<1x1x32xf32> to vector<1x32xf32>
    %119 = vector.broadcast %118 : vector<1x32xf32> to vector<8x32xf32>
    %120 = arith.addf %116, %119 : vector<8x32xf32>
    %121 = arith.addf %3, %120 : vector<8x32xf32>
    %c0_50 = arith.constant 0 : index
    %c0_51 = arith.constant 0 : index
    %c0_52 = arith.constant 0 : index
    %122 = vector.load %arg12[%c0_50, %c0_51, %c0_52] : memref<1x1x32xf32, #tpu.memory_space<vmem>>, vector<1x1x32xf32>
    %123 = vector.shape_cast %122 : vector<1x1x32xf32> to vector<1x32xf32>
    %c0_53 = arith.constant 0 : index
    %c0_54 = arith.constant 0 : index
    %c0_55 = arith.constant 0 : index
    %124 = vector.load %arg13[%c0_53, %c0_54, %c0_55] : memref<1x1x32xf32, #tpu.memory_space<vmem>>, vector<1x1x32xf32>
    %125 = vector.shape_cast %124 : vector<1x1x32xf32> to vector<1x32xf32>
    %cst_56 = arith.constant dense<0.000000e+00> : vector<8xf32>
    %126 = vector.multi_reduction <add>, %121, %cst_56 [1] : vector<8x32xf32> to vector<8xf32>
    %127 = vector.shape_cast %126 : vector<8xf32> to vector<8x1xf32>
    %cst_57 = arith.constant 3.200000e+01 : f32
    %128 = vector.broadcast %cst_57 : f32 to vector<8x1xf32>
    %129 = arith.divf %127, %128 : vector<8x1xf32>
    %130 = vector.broadcast %129 : vector<8x1xf32> to vector<8x32xf32>
    %131 = arith.subf %121, %130 : vector<8x32xf32>
    %132 = arith.mulf %131, %131 : vector<8x32xf32>
    %cst_58 = arith.constant dense<0.000000e+00> : vector<8xf32>
    %133 = vector.multi_reduction <add>, %132, %cst_58 [1] : vector<8x32xf32> to vector<8xf32>
    %134 = vector.shape_cast %133 : vector<8xf32> to vector<8x1xf32>
    %cst_59 = arith.constant 3.200000e+01 : f32
    %135 = vector.broadcast %cst_59 : f32 to vector<8x1xf32>
    %136 = arith.divf %134, %135 : vector<8x1xf32>
    %137 = vector.broadcast %129 : vector<8x1xf32> to vector<8x32xf32>
    %138 = arith.subf %121, %137 : vector<8x32xf32>
    %cst_60 = arith.constant 9.99999996E-13 : f32
    %139 = vector.broadcast %cst_60 : f32 to vector<8x1xf32>
    %140 = arith.addf %136, %139 : vector<8x1xf32>
    %141 = math.rsqrt %140 : vector<8x1xf32>
    %142 = vector.broadcast %141 : vector<8x1xf32> to vector<8x32xf32>
    %143 = arith.mulf %138, %142 : vector<8x32xf32>
    %144 = vector.broadcast %123 : vector<1x32xf32> to vector<8x32xf32>
    %145 = arith.mulf %143, %144 : vector<8x32xf32>
    %146 = vector.broadcast %125 : vector<1x32xf32> to vector<8x32xf32>
    %147 = arith.addf %145, %146 : vector<8x32xf32>
    %148 = arith.truncf %147 : vector<8x32xf32> to vector<8x32xbf16>
    %c0_61 = arith.constant 0 : index
    %c0_62 = arith.constant 0 : index
    %c0_63 = arith.constant 0 : index
    %149 = vector.load %arg14[%c0_61, %c0_62, %c0_63] : memref<1x32x64xbf16, #tpu.memory_space<vmem>>, vector<1x32x64xbf16>
    %150 = vector.shape_cast %149 : vector<1x32x64xbf16> to vector<32x64xbf16>
    %cst_64 = arith.constant dense<0.000000e+00> : vector<8x64xf32>
    %151 = tpu.matmul %148, %150, %cst_64 {dimension_numbers = #tpu.dot_dimension_numbers<[1], [0], [0], [1], [0, 0, 1, 1], [], []>} : vector<8x32xbf16>, vector<32x64xbf16>, vector<8x64xf32> -> vector<8x64xf32>
    %c0_65 = arith.constant 0 : index
    %c0_66 = arith.constant 0 : index
    %c0_67 = arith.constant 0 : index
    %152 = vector.load %arg15[%c0_65, %c0_66, %c0_67] : memref<1x1x64xf32, #tpu.memory_space<vmem>>, vector<1x1x64xf32>
    %153 = vector.shape_cast %152 : vector<1x1x64xf32> to vector<1x64xf32>
    %154 = vector.broadcast %153 : vector<1x64xf32> to vector<8x64xf32>
    %155 = arith.addf %151, %154 : vector<8x64xf32>
    %cst_68 = arith.constant 5.000000e-01 : f32
    %156 = vector.broadcast %cst_68 : f32 to vector<8x64xf32>
    %157 = arith.mulf %156, %155 : vector<8x64xf32>
    %cst_69 = arith.constant 4.471500e-02 : f32
    %158 = vector.broadcast %cst_69 : f32 to vector<8x64xf32>
    %159 = arith.mulf %158, %155 : vector<8x64xf32>
    %160 = arith.mulf %159, %155 : vector<8x64xf32>
    %161 = arith.mulf %160, %155 : vector<8x64xf32>
    %162 = arith.addf %155, %161 : vector<8x64xf32>
    %cst_70 = arith.constant 0.797884583 : f32
    %163 = vector.broadcast %cst_70 : f32 to vector<8x64xf32>
    %164 = arith.mulf %163, %162 : vector<8x64xf32>
    %165 = math.tanh %164 : vector<8x64xf32>
    %cst_71 = arith.constant 1.000000e+00 : f32
    %166 = vector.broadcast %cst_71 : f32 to vector<8x64xf32>
    %167 = arith.addf %166, %165 : vector<8x64xf32>
    %168 = arith.mulf %157, %167 : vector<8x64xf32>
    %169 = arith.truncf %168 : vector<8x64xf32> to vector<8x64xbf16>
    %c0_72 = arith.constant 0 : index
    %c0_73 = arith.constant 0 : index
    %c0_74 = arith.constant 0 : index
    %170 = vector.load %arg16[%c0_72, %c0_73, %c0_74] : memref<1x64x32xbf16, #tpu.memory_space<vmem>>, vector<1x64x32xbf16>
    %171 = vector.shape_cast %170 : vector<1x64x32xbf16> to vector<64x32xbf16>
    %cst_75 = arith.constant dense<0.000000e+00> : vector<8x32xf32>
    %172 = tpu.matmul %169, %171, %cst_75 {dimension_numbers = #tpu.dot_dimension_numbers<[1], [0], [0], [1], [0, 0, 1, 1], [], []>} : vector<8x64xbf16>, vector<64x32xbf16>, vector<8x32xf32> -> vector<8x32xf32>
    %c0_76 = arith.constant 0 : index
    %c0_77 = arith.constant 0 : index
    %c0_78 = arith.constant 0 : index
    %173 = vector.load %arg17[%c0_76, %c0_77, %c0_78] : memref<1x1x32xf32, #tpu.memory_space<vmem>>, vector<1x1x32xf32>
    %174 = vector.shape_cast %173 : vector<1x1x32xf32> to vector<1x32xf32>
    %175 = vector.broadcast %174 : vector<1x32xf32> to vector<8x32xf32>
    %176 = arith.addf %172, %175 : vector<8x32xf32>
    %177 = arith.addf %147, %176 : vector<8x32xf32>
    %c0_79 = arith.constant 0 : index
    %c0_80 = arith.constant 0 : index
    %c0_81 = arith.constant 0 : index
    %178 = vector.load %arg18[%c0_79, %c0_80, %c0_81] : memref<1x1x32xf32, #tpu.memory_space<vmem>>, vector<1x1x32xf32>
    %179 = vector.shape_cast %178 : vector<1x1x32xf32> to vector<1x32xf32>
    %c0_82 = arith.constant 0 : index
    %c0_83 = arith.constant 0 : index
    %c0_84 = arith.constant 0 : index
    %180 = vector.load %arg19[%c0_82, %c0_83, %c0_84] : memref<1x1x32xf32, #tpu.memory_space<vmem>>, vector<1x1x32xf32>
    %181 = vector.shape_cast %180 : vector<1x1x32xf32> to vector<1x32xf32>
    %cst_85 = arith.constant dense<0.000000e+00> : vector<8xf32>
    %182 = vector.multi_reduction <add>, %177, %cst_85 [1] : vector<8x32xf32> to vector<8xf32>
    %183 = vector.shape_cast %182 : vector<8xf32> to vector<8x1xf32>
    %cst_86 = arith.constant 3.200000e+01 : f32
    %184 = vector.broadcast %cst_86 : f32 to vector<8x1xf32>
    %185 = arith.divf %183, %184 : vector<8x1xf32>
    %186 = vector.broadcast %185 : vector<8x1xf32> to vector<8x32xf32>
    %187 = arith.subf %177, %186 : vector<8x32xf32>
    %188 = arith.mulf %187, %187 : vector<8x32xf32>
    %cst_87 = arith.constant dense<0.000000e+00> : vector<8xf32>
    %189 = vector.multi_reduction <add>, %188, %cst_87 [1] : vector<8x32xf32> to vector<8xf32>
    %190 = vector.shape_cast %189 : vector<8xf32> to vector<8x1xf32>
    %cst_88 = arith.constant 3.200000e+01 : f32
    %191 = vector.broadcast %cst_88 : f32 to vector<8x1xf32>
    %192 = arith.divf %190, %191 : vector<8x1xf32>
    %193 = vector.broadcast %185 : vector<8x1xf32> to vector<8x32xf32>
    %194 = arith.subf %177, %193 : vector<8x32xf32>
    %cst_89 = arith.constant 9.99999996E-13 : f32
    %195 = vector.broadcast %cst_89 : f32 to vector<8x1xf32>
    %196 = arith.addf %192, %195 : vector<8x1xf32>
    %197 = math.rsqrt %196 : vector<8x1xf32>
    %198 = vector.broadcast %197 : vector<8x1xf32> to vector<8x32xf32>
    %199 = arith.mulf %194, %198 : vector<8x32xf32>
    %200 = vector.broadcast %179 : vector<1x32xf32> to vector<8x32xf32>
    %201 = arith.mulf %199, %200 : vector<8x32xf32>
    %202 = vector.broadcast %181 : vector<1x32xf32> to vector<8x32xf32>
    %203 = arith.addf %201, %202 : vector<8x32xf32>
    %c0_90 = arith.constant 0 : index
    %c0_91 = arith.constant 0 : index
    %204 = vector.load %arg23[%c0_90, %c0_91] : memref<8x32xf32, #tpu.memory_space<vmem>>, vector<8x32xf32>
    tpu.vector_store %arg23[%c0_90, %c0_91], %203 {strides = array<i32>} : memref<8x32xf32, #tpu.memory_space<vmem>>, vector<8x32xf32>,
    %c1_i32 = arith.constant 1 : i32
    %205 = arith.cmpi eq, %arg1, %c1_i32 : i32
    %206 = arith.extui %205 : i1 to i32
    %c0_i32_92 = arith.constant 0 : i32
    %207 = arith.cmpi ne, %206, %c0_i32_92 : i32
    scf.if %207 {
      %208 = vector.extract_strided_slice %203 {offsets = [0, 0], sizes = [1, 32], strides = [1, 1]} : vector<8x32xf32> to vector<1x32xf32>
      %c0_93 = arith.constant 0 : index
      %c0_94 = arith.constant 0 : index
      %209 = vector.load %arg20[%c0_93, %c0_94] : memref<32x128xf32, #tpu.memory_space<vmem>>, vector<32x128xf32>
      %cst_95 = arith.constant dense<0.000000e+00> : vector<1x128xf32>
      %210 = tpu.matmul %208, %209, %cst_95 {dimension_numbers = #tpu.dot_dimension_numbers<[1], [0], [0], [1], [0, 0, 1, 1], [], []>} : vector<1x32xf32>, vector<32x128xf32>, vector<1x128xf32> -> vector<1x128xf32>
      %c0_96 = arith.constant 0 : index
      %c0_97 = arith.constant 0 : index
      %211 = vector.load %arg21[%c0_96, %c0_97] : memref<1x128xf32, #tpu.memory_space<vmem>>, vector<1x128xf32>
      %212 = arith.addf %210, %211 : vector<1x128xf32>
      %c0_98 = arith.constant 0 : index
      %c0_99 = arith.constant 0 : index
      %c0_100 = arith.constant 0 : index
      %213 = vector.load %arg22[%c0_98, %c0_99, %c0_100] : memref<1x1x128xf32, #tpu.memory_space<vmem>>, vector<1x1x128xf32>
      %214 = vector.shape_cast %213 : vector<1x1x128xf32> to vector<1x128xf32>
      %215 = vector.shape_cast %212 : vector<1x128xf32> to vector<1x1x128xf32>
      tpu.vector_store %arg22[%c0_98, %c0_99, %c0_100], %215 {strides = array<i32>} : memref<1x1x128xf32, #tpu.memory_space<vmem>>, vector<1x1x128xf32>,
    } else {
    }
    return
  }
  func.func @transform_0(%arg0: i32, %arg1: i32) -> (i32, i32, i32) {
    %c0_i32 = arith.constant 0 : i32
    %c0_i32_0 = arith.constant 0 : i32
    %c0_i32_1 = arith.constant 0 : i32
    return %arg0, %c0_i32, %c0_i32_0 : i32, i32, i32
  }
  func.func @transform_1(%arg0: i32, %arg1: i32) -> (i32, i32, i32) {
    %c0_i32 = arith.constant 0 : i32
    %c0_i32_0 = arith.constant 0 : i32
    %c0_i32_1 = arith.constant 0 : i32
    return %arg0, %c0_i32, %c0_i32_0 : i32, i32, i32
  }
  func.func @transform_2(%arg0: i32, %arg1: i32) -> (i32, i32, i32) {
    %c0_i32 = arith.constant 0 : i32
    %c0_i32_0 = arith.constant 0 : i32
    %c0_i32_1 = arith.constant 0 : i32
    return %arg1, %c0_i32, %c0_i32_0 : i32, i32, i32
  }
  func.func @transform_3(%arg0: i32, %arg1: i32) -> (i32, i32, i32) {
    %c0_i32 = arith.constant 0 : i32
    %c0_i32_0 = arith.constant 0 : i32
    %c0_i32_1 = arith.constant 0 : i32
    return %arg1, %c0_i32, %c0_i32_0 : i32, i32, i32
  }
  func.func @transform_4(%arg0: i32, %arg1: i32) -> (i32, i32, i32) {
    %c0_i32 = arith.constant 0 : i32
    %c0_i32_0 = arith.constant 0 : i32
    %c0_i32_1 = arith.constant 0 : i32
    return %arg1, %c0_i32, %c0_i32_0 : i32, i32, i32
  }
  func.func @transform_5(%arg0: i32, %arg1: i32) -> (i32, i32, i32) {
    %c0_i32 = arith.constant 0 : i32
    %c0_i32_0 = arith.constant 0 : i32
    %c0_i32_1 = arith.constant 0 : i32
    return %arg1, %c0_i32, %c0_i32_0 : i32, i32, i32
  }
  func.func @transform_6(%arg0: i32, %arg1: i32) -> (i32, i32, i32) {
    %c0_i32 = arith.constant 0 : i32
    %c0_i32_0 = arith.constant 0 : i32
    %c0_i32_1 = arith.constant 0 : i32
    return %arg1, %c0_i32, %c0_i32_0 : i32, i32, i32
  }
  func.func @transform_7(%arg0: i32, %arg1: i32) -> (i32, i32, i32) {
    %c0_i32 = arith.constant 0 : i32
    %c0_i32_0 = arith.constant 0 : i32
    %c0_i32_1 = arith.constant 0 : i32
    return %arg1, %c0_i32, %c0_i32_0 : i32, i32, i32
  }
  func.func @transform_8(%arg0: i32, %arg1: i32) -> (i32, i32, i32) {
    %c0_i32 = arith.constant 0 : i32
    %c0_i32_0 = arith.constant 0 : i32
    %c0_i32_1 = arith.constant 0 : i32
    return %arg1, %c0_i32, %c0_i32_0 : i32, i32, i32
  }
  func.func @transform_9(%arg0: i32, %arg1: i32) -> (i32, i32, i32) {
    %c0_i32 = arith.constant 0 : i32
    %c0_i32_0 = arith.constant 0 : i32
    %c0_i32_1 = arith.constant 0 : i32
    return %arg1, %c0_i32, %c0_i32_0 : i32, i32, i32
  }
  func.func @transform_10(%arg0: i32, %arg1: i32) -> (i32, i32, i32) {
    %c0_i32 = arith.constant 0 : i32
    %c0_i32_0 = arith.constant 0 : i32
    %c0_i32_1 = arith.constant 0 : i32
    return %arg1, %c0_i32, %c0_i32_0 : i32, i32, i32
  }
  func.func @transform_11(%arg0: i32, %arg1: i32) -> (i32, i32, i32) {
    %c0_i32 = arith.constant 0 : i32
    %c0_i32_0 = arith.constant 0 : i32
    %c0_i32_1 = arith.constant 0 : i32
    return %arg1, %c0_i32, %c0_i32_0 : i32, i32, i32
  }
  func.func @transform_12(%arg0: i32, %arg1: i32) -> (i32, i32, i32) {
    %c0_i32 = arith.constant 0 : i32
    %c0_i32_0 = arith.constant 0 : i32
    %c0_i32_1 = arith.constant 0 : i32
    return %arg1, %c0_i32, %c0_i32_0 : i32, i32, i32
  }
  func.func @transform_13(%arg0: i32, %arg1: i32) -> (i32, i32, i32) {
    %c0_i32 = arith.constant 0 : i32
    %c0_i32_0 = arith.constant 0 : i32
    %c0_i32_1 = arith.constant 0 : i32
    return %arg1, %c0_i32, %c0_i32_0 : i32, i32, i32
  }
  func.func @transform_14(%arg0: i32, %arg1: i32) -> (i32, i32, i32) {
    %c0_i32 = arith.constant 0 : i32
    %c0_i32_0 = arith.constant 0 : i32
    %c0_i32_1 = arith.constant 0 : i32
    return %arg1, %c0_i32, %c0_i32_0 : i32, i32, i32
  }
  func.func @transform_15(%arg0: i32, %arg1: i32) -> (i32, i32, i32) {
    %c0_i32 = arith.constant 0 : i32
    %c0_i32_0 = arith.constant 0 : i32
    %c0_i32_1 = arith.constant 0 : i32
    return %arg1, %c0_i32, %c0_i32_0 : i32, i32, i32
  }
  func.func @transform_16(%arg0: i32, %arg1: i32) -> (i32, i32, i32) {
    %c0_i32 = arith.constant 0 : i32
    %c0_i32_0 = arith.constant 0 : i32
    %c0_i32_1 = arith.constant 0 : i32
    return %arg1, %c0_i32, %c0_i32_0 : i32, i32, i32
  }
  func.func @transform_17(%arg0: i32, %arg1: i32) -> (i32, i32, i32) {
    %c0_i32 = arith.constant 0 : i32
    %c0_i32_0 = arith.constant 0 : i32
    %c0_i32_1 = arith.constant 0 : i32
    return %arg1, %c0_i32, %c0_i32_0 : i32, i32, i32
  }
  func.func @transform_18(%arg0: i32, %arg1: i32) -> (i32, i32) {
    %c0_i32 = arith.constant 0 : i32
    %c0_i32_0 = arith.constant 0 : i32
    %c0_i32_1 = arith.constant 0 : i32
    return %c0_i32, %c0_i32_0 : i32, i32
  }
  func.func @transform_19(%arg0: i32, %arg1: i32) -> (i32, i32) {
    %c0_i32 = arith.constant 0 : i32
    %c0_i32_0 = arith.constant 0 : i32
    %c0_i32_1 = arith.constant 0 : i32
    return %c0_i32, %c0_i32_0 : i32, i32
  }
  func.func @transform_20(%arg0: i32, %arg1: i32) -> (i32, i32, i32) {
    %c0_i32 = arith.constant 0 : i32
    %c0_i32_0 = arith.constant 0 : i32
    %c0_i32_1 = arith.constant 0 : i32
    return %arg0, %c0_i32, %c0_i32_0 : i32, i32, i32
  }
}

</mosaic_0001>

<bundles_post_ra>
// kernel: tpu_custom_call.1
= control target key start
LH: loop header
LB: loop body
LE: loop exit
PB: predicated region body
PF: predicated region fallthrough
CT: control target
= control target key end

     0   :  { %s3367_s0 = inlined_call_operand.hbm [shape: f32[2,8,32], index: 0, kind: input, shape index: {}]   ;;  %s3368_s1 = inlined_call_operand.hbm [shape: f32[2,1,8], index: 1, kind: input, shape index: {}]   ;;  %s3369_s2 = inlined_call_operand.vmem [shape: bf16[2,32,32], index: 2, kind: input, shape index: {}]   ;;  %s3370_s3 = inlined_call_operand.hbm [shape: f32[2,1,32], index: 3, kind: input, shape index: {}]   ;;  %s3371_s4 = inlined_call_operand.vmem [shape: bf16[2,32,32], index: 4, kind: input, shape index: {}]   ;;  %s3372_s5 = inlined_call_operand.vmem [shape: f32[2,1,32], index: 5, kind: input, shape index: {}]   ;;  %s3373_s6 = inlined_call_operand.vmem [shape: bf16[2,32,32], index: 6, kind: input, shape index: {}]   ;;  %s3374_s7 = inlined_call_operand.vmem [shape: f32[2,1,32], index: 7, kind: input, shape index: {}]   ;;  %s3375_s8 = inlined_call_operand.hbm [shape: bf16[2,32,32], index: 8, kind: input, shape index: {}]   ;;  %s3376_s9 = inlined_call_operand.vmem [shape: f32[2,1,32], index: 9, kind: input, shape index: {}]   ;;  %s3377_s10 = inlined_call_operand.vmem [shape: f32[2,1,32], index: 10, kind: input, shape index: {}]   ;;  %s3378_s11 = inlined_call_operand.hbm [shape: f32[2,1,32], index: 11, kind: input, shape index: {}]   ;;  %s3379_s12 = inlined_call_operand.hbm [shape: bf16[2,32,64], index: 12, kind: input, shape index: {}]   ;;  %s3380_s13 = inlined_call_operand.vmem [shape: f32[2,1,64], index: 13, kind: input, shape index: {}]   ;;  %s3381_s14 = inlined_call_operand.vmem [shape: bf16[2,64,32], index: 14, kind: input, shape index: {}]   ;;  %s3382_s15 = inlined_call_operand.vmem [shape: f32[2,1,32], index: 15, kind: input, shape index: {}]   ;;  %s3383_s16 = inlined_call_operand.vmem [shape: f32[2,1,32], index: 16, kind: input, shape index: {}]   ;;  %s3384_s17 = inlined_call_operand.hbm [shape: f32[2,1,32], index: 17, kind: input, shape index: {}]   ;;  %s3385_s18 = inlined_call_operand.hbm [shape: f32[32,128], index: 18, kind: input, shape index: {}]   ;;  %s3386_s19 = inlined_call_operand.vmem [shape: f32[1,128], index: 19, kind: input, shape index: {}]   ;;  %s3387_s20 = inlined_call_operand.hbm [shape: f32[2,1,128], index: 20, kind: output, shape index: {}]  }
   0x1   :  { %3410 = sst [smem:[#allocation42_spill]] %s3367_s0 }
   0x2   :  { %3411 = sst [smem:[#allocation43_spill]] %s3368_s1 }
   0x3   :  { %3412 = sst [smem:[#allocation44_spill]] %s3369_s2 }
   0x4   :  { %3413 = sst [smem:[#allocation45_spill]] %s3370_s3 }
   0x5   :  { %3414 = sst [smem:[#allocation46_spill]] %s3371_s4 }
   0x6   :  { %3415 = sst [smem:[#allocation47_spill]] %s3372_s5 }
   0x7   :  { %3416 = sst [smem:[#allocation48_spill]] %s3373_s6 }
   0x8   :  { %3417 = sst [smem:[#allocation49_spill]] %s3374_s7 }
   0x9   :  { %3418 = sst [smem:[#allocation50_spill]] %s3375_s8 }
   0xa   :  { %3419 = sst [smem:[#allocation51_spill]] %s3376_s9 }
   0xb   :  { %3420 = sst [smem:[#allocation52_spill]] %s3377_s10 }
   0xc   :  { %3421 = sst [smem:[#allocation53_spill]] %s3378_s11 }
   0xd   :  { %3422 = sst [smem:[#allocation54_spill]] %s3379_s12 }
   0xe   :  { %3423 = sst [smem:[#allocation55_spill]] %s3380_s13 }
   0xf   :  { %3424 = sst [smem:[#allocation56_spill]] %s3381_s14 }
  0x10   :  { %3425 = sst [smem:[#allocation57_spill]] %s3382_s15 }
  0x11   :  { %3426 = sst [smem:[#allocation58_spill]] %s3383_s16 }
  0x12   :  { %3427 = sst [smem:[#allocation59_spill]] %s3384_s17 }
  0x13   :  { %3428 = sst [smem:[#allocation60_spill]] %s3385_s18 }
  0x14   :  { %3429 = sst [smem:[#allocation61_spill]] %s3386_s19 }
  0x15   :  { %3430 = sst [smem:[#allocation62_spill]] %s3387_s20 }
  0x16   :  { %25 = vsyncpa [#allocation4], 0 }
  0x17   :  { %27 = vsyncpa [#allocation4 + $0x1], 0 }
  0x18   :  { %28 = vsyncpa [#allocation7], 0 }
  0x19   :  { %30 = vsyncpa [#allocation7 + $0x1], 0 }
  0x1a   :  { %31 = vsyncpa [#allocation10], 0 }
  0x1b   :  { %33 = vsyncpa [#allocation10 + $0x1], 0 }
  0x1c   :  { %34 = vsyncpa [#allocation13], 0 }
  0x1d   :  { %36 = vsyncpa [#allocation13 + $0x1], 0 }
  0x1e   :  { %37 = vsyncpa [#allocation16], 0 }
  0x1f   :  { %38 = vsyncpa [#allocation5], 0 }
  0x20   :  { %40 = vsyncpa [#allocation5 + $0x1], 0  ;;  %s2860_s1 = smov 0   ;;  %s2862_s22 = smov 0  }
  0x21   :  { %s2864_s23 = smov 0   ;;  %s2866_s24 = smov 0  }
  0x22   :  { %s2868_s2 = smov 0   ;;  %s2870_s25 = smov 0  }
  0x23   :  { %s2872_s3 = smov 0   ;;  %s2874_s26 = smov 0  }
  0x24   :  { %s2876_s27 = smov 0   ;;  %s2878_s28 = smov 0  }
  0x25   :  { %s2880_s4 = smov 0  }
  0x26 LB: > { %3431 = sst [smem:[#allocation25_spill]] %s2705_s22  ;;  %s2916_s29 = sadd.s32 4294967295, %s2741_s4   ;;  %s2741_s4 = sphi %s2880_s4, %s46_s4   ;;  %s2737_s28 = sphi %s2878_s28, %s3514_s28   ;;  %s2733_s27 = sphi %s2876_s27, %s3513_s27   ;;  %s2729_s26 = sphi %s2874_s26, %s3512_s26   ;;  %s2725_s3 = sphi %s2872_s3, %s3511_s3   ;;  %s2721_s25 = sphi %s2870_s25, %s3510_s25   ;;  %s2717_s2 = sphi %s2868_s2, %s3509_s2   ;;  %s2713_s24 = sphi %s2866_s24, %s3508_s24   ;;  %s2709_s23 = sphi %s2864_s23, %s3507_s23   ;;  %s2705_s22 = sphi %s2862_s22, %s3506_s22   ;;  %s2701_s1 = sphi %s2860_s1, %s3505_s1  }
  0x27   : > { %3432 = sst [smem:[#allocation26_spill]] %s2709_s23  ;;  %s2051_s30 = sadd.s32 4294967294, %s2741_s4  }
  0x28   : > { %3433 = sst [smem:[#allocation27_spill]] %s2713_s24  ;;  %s55_s0 = sadd.s32 1, %s2733_s27 }
  0x29   : > { %3434 = sst [smem:[#allocation28_spill]] %s2717_s2  ;;  %s58_s21 = sadd.s32 1, %s2737_s28 }
  0x2a   : > { %3435 = sst [smem:[#allocation29_spill]] %s2721_s25  ;;  %p56_p0 = scmp.ge.s32.totalorder %s55_s0, 2 }
  0x2b   : > { %3436 = sst [smem:[#allocation30_spill]] %s2725_s3  ;;  %s65_s20 = sadd.s32 1, %s2721_s25 }
  0x2c   : > { %3437 = sst [smem:[#allocation31_spill]] %s2729_s26  ;;  %p72_p1 = scmp.ne.s32.totalorder %s2721_s25, %s2717_s2 }
  0x2d   : > { %3438 = sst [smem:[#allocation32_spill]] %s2733_s27  ;;  %p73_p2 = scmp.eq.s32.totalorder %s2741_s4, 0 }
  0x2e   : > { %3439 = sst [smem:[#allocation33_spill]] %s2737_s28  ;;  %s3516_s0 = smov (%p56_p0, %s55_s0), 0 }
  0x2f   : > { %3440 = sst [smem:[#allocation34_spill]] %s2741_s4  ;;  %s3518_s21 = smov (!%p56_p0, %s58_s21), %s2737_s28 }
  0x30   : > { %3441 = sst [smem:[#allocation35_spill]] %s3516_s0  ;;  %p2933_p3 = por %p73_p2, %p72_p1 }
  0x31   : > { %p3390_p4 = scmp.ne.s32.totalorder %s2717_s2, %s2713_s24  ;;  %p60_p5 = scmp.ge.s32.totalorder %s3518_s21, 2 }
  0x32   : > { %p79_p6 = scmp.eq.s32.totalorder %s2916_s29, 0  ;;  %s140_s19 = ssub.s32 %s2733_s27, %s3516_s0 }
  0x33   : > { %s143_s16 = sadd.s32 1, %s2709_s23  ;;  %s3520_s21 = smov (%p60_p5, %s3518_s21), 0 }
  0x34   : > { %3443 = sst [smem:[#allocation36_spill]] %s3520_s21  ;;  %p2950_p7 = por %p79_p6, %p3390_p4 }
  0x35   : > { %p141_p8 = scmp.eq.s32.totalorder %s140_s19, 0  ;;  %s62_s14 = ssub.s32 %s2737_s28, %s3520_s21 }
  0x36   : > { %p150_p9 = scmp.ne.s32.totalorder %s2709_s23, %s2705_s22  ;;  %p63_p10 = scmp.eq.s32.totalorder %s62_s14, 0 }
  0x37   : > { %p156_p11 = scmp.ne.s32.totalorder %s2705_s22, %s2701_s1  ;;  %p586_p0 = scmp.eq.s32.totalorder %s2916_s29, 3 }
  0x38   : > { %s2961_s0 = scalar_select %p141_p8, %s2709_s23, %s143_s16  }
  0x39   : > { %s2964_s13 = scalar_select %p63_p10, %s2721_s25, %s65_s20  }
  0x3a   : > { %3445 = sst [smem:[#allocation37_spill]] %s2961_s0  ;;  %p2968_p12 = por %p150_p9, %p73_p2 }
  0x3b   : > { %3446 = sst [smem:[#allocation38_spill]] %s2964_s13  ;;  %p2974_p13 = por %p156_p11, %p79_p6 }
  0x3c   : > { %p592_p5 = scmp.eq.s32.totalorder %s2051_s30, 3  ;;  %p2982_p4 = por %p586_p0, %p72_p1 }
  0x3d   : > { %s3448_s9 = scalar_select %p2974_p13, 1, 0 }
  0x3e   : > { %s3450_s14 = scalar_select %p2982_p4, 1, 0 }
  0x3f   : > { %3449 = sst [smem:[#allocation39_spill]] %s3448_s9  ;;  %p3452_p8 = scmp.ne.s32.totalorder %s2717_s2, %s2713_s24 }
  0x40   : > { %3451 = sst [smem:[#allocation40_spill]] %s3450_s14  ;;  %p2222_p2 = scmp.lt.s32.totalorder %s2741_s4, 4 }
  0x41   : > { %p2989_p10 = por %p592_p5, %p3452_p8  ;;  %s2995_s19 = sand.u32 1, %s2721_s25  }
  0x42   : > { %s2998_s20 = sand.u32 1, %s2741_s4   ;;  %p3002_p9 = pnand %p2222_p2, %p2933_p3 }
  0x43   : > { %s3453_s16 = scalar_select %p2989_p10, 1, 0 }
  0x44   : > { %s3456_s13 = sld [smem:[#allocation43_spill]]  ;;  %s3397_s14 = scalar_lea.sflag [#allocation7], %s2998_s20 }
  0x45   : > { %3454 = sst [smem:[#allocation41_spill]] %s3453_s16  ;;  %s651_s16 = scalar_lea.vmem [#allocation6], %s2995_s19 }
  0x46   : > { %s658_s24 = sshll.u32 %s651_s16, 4  ;;  %p3018_p1 = pnand %p2222_p2, %p2968_p12  ;;  %s659_s24 = int_to_ptr.vmem [resolvable:$true] %s658_s24 }
  0x47   : > { %s3023_s21 = sand.u32 1, %s2709_s23   ;;  %s2151_s16 = sshll.u32 %s2733_s27, 4 }
  0x48   : > { %s3458_s8 = sld [smem:[#allocation50_spill]]  ;;  %s2744_s23 = smov 4  }
  0x49   : > { %s3459_s12 = sld [smem:[#allocation54_spill]]  ;;  %p2052_p3 = scmp.ge.s32.totalorder %s2741_s4, 1 }
  0x4a   : > { %s654_s0 = scalar_lea.hbm %s3456_s13, %s2737_s28  ;;  %s2057_s13 = sshll.u32 %s3023_s21, 4 }
  0x4b   : > { %s656_s25 = sshll.u32 %s654_s0, 4  ;;  %s722_s6 = scalar_lea.vmem [#allocation9], %s2057_s13  ;;  %s657_s25 = int_to_ptr.hbm [resolvable:$true] %s656_s25 }
  0x4c   : > { %2201 = dma.hbm_to_vmem [thread:$0]  (!%p3002_p9), %s657_s25, 16, %s659_s24, %s3397_s14  }
  0x4d   : > { %s730_s24 = sshll.u32 %s722_s6, 4  ;;  %s3403_s25 = scalar_lea.sflag [#allocation10], %s2998_s20  ;;  %s731_s24 = int_to_ptr.vmem [resolvable:$true] %s730_s24 }
  0x4e   : > { %s727_s7 = scalar_lea.hbm %s3458_s8, %s2151_s16  ;;  %s2743_s14 = smov 64  }
  0x4f   : > { %s728_s10 = sshll.u32 %s727_s7, 4  ;;  %s778_s30 = scalar_lea.hbm %s3459_s12, %s2151_s16  ;;  %s729_s10 = int_to_ptr.hbm [resolvable:$true] %s728_s10 }
  0x50   : > { %2207 = dma.hbm_to_vmem [thread:$0]  (!%p3018_p1), %s729_s10, 256, %s731_s24, %s3403_s25, %s2743_s14, %s2743_s14, %s2744_s23  }
  0x51   : > { %s773_s0 = scalar_lea.vmem [#allocation12], %s2057_s13  ;;  %s779_s6 = sshll.u32 %s778_s30, 4  ;;  %s780_s6 = int_to_ptr.hbm [resolvable:$true] %s779_s6 }
  0x52   : > { %s781_s8 = sshll.u32 %s773_s0, 4  ;;  %s3402_s7 = scalar_lea.sflag [#allocation13], %s2998_s20  ;;  %s782_s8 = int_to_ptr.vmem [resolvable:$true] %s781_s8 }
  0x53   : > { %2213 = dma.hbm_to_vmem [thread:$0]  (!%p3018_p1), %s780_s6, 256, %s782_s8, %s3402_s7, %s2743_s14, %s2743_s14, %s2744_s23  }
  0x54   : > { %p599_p11 = scmp.lt.s32.totalorder %s2741_s4, 5  ;;  %s3460_s18 = sld [smem:[#allocation60_spill]] }
  0x55   : > { %s2745_s3 = smov [#allocation15]   ;;  %s2055_s8 = sshll.u32 %s2995_s19, 3 }
  0x56   : > { %p3048_p12 = pnand %p2052_p3, %p599_p11  ;;  %s612_s13 = sshll.u32 %s2745_s3, 4  ;;  %s613_s13 = int_to_ptr.vmem [resolvable:$true] %s612_s13 }
  0x57   : > { %s2056_s9 = sshll.u32 %s2737_s28, 3  ;;  %s633_s23 = scalar_lea.vmem [#allocation3], %s2055_s8 }
  0x58   : > { %p2191_p0 = pneg %p3048_p12  ;;  %s641_s14 = sshll.u32 %s633_s23, 4  ;;  %s642_s14 = int_to_ptr.vmem [resolvable:$true] %s641_s14 }
  0x59   : > { %s3462_s0 = sld [smem:[#allocation42_spill]]  ;;  %s2746_s24 = smov 128  }
  0x5a   : > { %s610_s10 = sshll.u32 %s3460_s18, 4  ;;  %p2192_p5 = pnand %p2191_p0, %p79_p6  ;;  %s611_s10 = int_to_ptr.hbm [resolvable:$true] %s610_s10 }
  0x5b   : > { %s2747_s3 = smov 8   ;;  %s630_s25 = scalar_lea.sflag [#allocation4], %s2995_s19 }
  0x5c   : > { %2194 = dma.hbm_to_vmem [thread:$0]  (!%p2192_p5), %s611_s10, 512, %s613_s13, [#allocation16], %s2746_s24, %s2746_s24, %s2747_s3  }
  0x5d   : > { %s3463_s16 = sld [smem:[#allocation45_spill]]  ;;  %s3464_s10 = scalar_lea.sflag [#allocation7], %s2998_s20 }
  0x5e   : > { %s3465_s11 = sld [smem:[#allocation53_spill]]  ;;  %s820_s23 = scalar_lea.vmem [#allocation14], %s3023_s21 }
  0x5f   : > { %s637_s6 = scalar_lea.hbm %s3462_s0, %s2056_s9  ;;  %s676_s9 = scalar_lea.vmem [#allocation8], %s3023_s21 }
  0x60   : > { %s639_s7 = sshll.u32 %s637_s6, 4  ;;  %s683_s0 = sshll.u32 %s676_s9, 4  ;;  %s640_s7 = int_to_ptr.hbm [resolvable:$true] %s639_s7  ;;  %s684_s0 = int_to_ptr.vmem [resolvable:$true] %s683_s0 }
  0x61   : > { %2198 = dma.hbm_to_vmem [thread:$0]  (!%p3002_p9), %s640_s7, 128, %s642_s14, %s630_s25  }
  0x62   : > { %s755_s25 = scalar_lea.vmem [#allocation11], %s3023_s21  ;;  %s3466_s6 = scalar_lea.sflag [#allocation10], %s2998_s20 }
  0x63   : > { %s679_s30 = scalar_lea.hbm %s3463_s16, %s2733_s27  ;;  %s762_s7 = sshll.u32 %s755_s25, 4  ;;  %s763_s7 = int_to_ptr.vmem [resolvable:$true] %s762_s7 }
  0x64   : > { %s681_s12 = sshll.u32 %s679_s30, 4  ;;  %s758_s1 = scalar_lea.hbm %s3465_s11, %s2733_s27  ;;  %s682_s12 = int_to_ptr.hbm [resolvable:$true] %s681_s12 }
  0x65   : > { %2204 = dma.hbm_to_vmem [thread:$0]  (!%p3018_p1), %s682_s12, 16, %s684_s0, %s3464_s10  }
  0x66   : > { %s760_s14 = sshll.u32 %s758_s1, 4  ;;  %s3467_s17 = sld [smem:[#allocation59_spill]]  ;;  %s761_s14 = int_to_ptr.hbm [resolvable:$true] %s760_s14 }
  0x67   : > { %2210 = dma.hbm_to_vmem [thread:$0]  (!%p3018_p1), %s761_s14, 16, %s763_s7, %s3466_s6  }
  0x68   : > { %s827_s16 = sshll.u32 %s820_s23, 4  ;;  %s3468_s12 = scalar_lea.sflag [#allocation13], %s2998_s20  ;;  %s828_s16 = int_to_ptr.vmem [resolvable:$true] %s827_s16 }
  0x69   : > { %s3094_s9 = sand.u32 (!%p3048_p12), 1, %s2717_s2  }
  0x6a   : > { %836 = sbr.rel (%p3048_p12) target bundleno = 2191 (0x88f), region = 100  ;;  %s2064_s0 = sshll.u32 (!%p3048_p12), %s3094_s9, 3 }
  0x6b   : > { %s839_s10 = scalar_lea.sflag (!%p3048_p12), [#allocation4], %s3094_s9  ;;  %s3098_s13 = scalar_lea.vmem (!%p3048_p12), [#allocation3], %s2064_s0 }
  0x6c   : > { %s823_s8 = scalar_lea.hbm %s3467_s17, %s2733_s27 }
  0x6d   : > { %s825_s30 = sshll.u32 %s823_s8, 4  ;;  %s826_s30 = int_to_ptr.hbm [resolvable:$true] %s825_s30 }
  0x6e   : > { %2216 = dma.hbm_to_vmem [thread:$0]  (!%p3018_p1), %s826_s30, 16, %s828_s16, %s3468_s12  }
  0x6f   : > { %2672 = dma.done.wait (%p2950_p7), %s839_s10, 128  }
  0x70   : > { %2674 = vsyncadd (%p2950_p7), %s839_s10, 4294967168  ;;  %s848_s20 = sand.u32 1, %s2916_s29  }
  0x71   : > { %s849_s26 = scalar_lea.sflag [#allocation7], %s848_s20 }
  0x72   : > { %2676 = dma.done.wait (%p2950_p7), %s849_s26, 16  }
  0x73   : > { %2678 = vsyncadd (%p2950_p7), %s849_s26, 4294967280  ;;  %s3111_s19 = sand.u32 1, %s2705_s22  }
  0x74   : > { %2680 = dma.done.wait (%p2974_p13), %s849_s26, 16  }
  0x75   : > { %2682 = vsyncadd (%p2974_p13), %s849_s26, 4294967280  ;;  %s2065_s25 = sshll.u32 %s3111_s19, 4  ;;  %s867_s7 = scalar_lea.sflag [#allocation10], %s848_s20 }
  0x76   : > { %s3119_s14 = scalar_lea.vmem [#allocation9], %s2065_s25 }
  0x77   : > { %2684 = dma.done.wait (%p2974_p13), %s867_s7, 272  }
  0x78   : > { %2686 = vsyncadd (%p2974_p13), %s867_s7, 4294967024  ;;  %s886_s6 = scalar_lea.sflag [#allocation13], %s848_s20  ;;  %s3126_s24 = scalar_lea.vmem [#allocation12], %s2065_s25 }
  0x79   : > { %2688 = dma.done.wait (%p2974_p13), %s886_s6, 272  }
  0x7a   : > { %2690 = vsyncadd (%p2974_p13), %s886_s6, 4294967024 }
  0x7b   : > { %2692 = dma.done.wait (%p79_p6), [#allocation16], 512  }
  0x7c   : > { %2694 = vsyncadd (%p79_p6), [#allocation16], 4294966784  ;;  %s3470_s8 = sld [smem:[#allocation30_spill]]  ;;  %s1026_s0 = scalar_lea.vmem [#allocation17], %s3094_s9 }
  0x7d   : > { %s3472_s26 = sld [smem:[#allocation44_spill]] }
  0x7e   : > { %s3473_s6 = sld [smem:[#allocation46_spill]] }
  0x7f   : > { %s3474_s1 = sld [smem:[#allocation48_spill]] }
  0x80   : > { %s3477_s20 = sld [smem:[#allocation52_spill]] }
  0x81   : > { %s3478_s7 = sld [smem:[#allocation55_spill]] }
  0x82   : > { %p1027_p7 = scmp.lt.s32.totalorder %s3470_s8, 1  ;;  %s3479_s15 = sld [smem:[#allocation56_spill]] }
  0x83   : > { %s3480_s28 = sld [smem:[#allocation57_spill]]  ;;  %p2076_p6 = scmp.ne.s32.totalorder %s3470_s8, 0 }
  0x84   : > { %s3139_s23 = scalar_select %p1027_p7, %s3470_s8, 1 }
  0x85   : > { %s3481_s12 = sld [smem:[#allocation58_spill]] }
  0x86   : > { %s2153_s16 = sshll.u32 %s3139_s23, 4  ;;  %s2156_s4 = sshll.u32 %s3139_s23, 5 }
  0x87   : > { %s1031_s5 = scalar_lea.vmem %s3472_s26, %s2153_s16  ;;  %s1036_s3 = scalar_lea.vmem %s3473_s6, %s2153_s16 }
  0x88   : > { %s3155_s11 = scalar_lea.vmem %s3474_s1, %s2153_s16  ;;  %s1053_s26 = scalar_lea.vmem %s3477_s20, %s3139_s23 }
  0x89   : > { %s1056_s6 = scalar_lea.vmem %s3478_s7, %s3139_s23  ;;  %s3177_s16 = scalar_lea.vmem %s3479_s15, %s2156_s4 }
  0x8a   : > { %s1064_s27 = scalar_lea.vmem %s3480_s28, %s3139_s23  ;;  %1072 = sbr.rel (%p2076_p6) target bundleno = 145 (0x91), region = 136 }
  0x8b   : > { %s1067_s29 = scalar_lea.vmem %s3481_s12, %s3139_s23 }
  0x8f   : > { %v1073_v0 = vld [vmem:[%s3098_s13] sm:$0xff]  ;;  %vm1074_vm0 = vcmask 261120  }
  0x90   : > { %1075 = vst.msk [vmem:[#allocation2] sm:$0xff] %vm1074_vm0, %v1073_v0 }
  0x91 PF: > { %v2158_v1 = vld [vmem:[%s1031_s5 + $0x8] sm:$0xff]  ;;  %v2157_v3 = vld [vmem:[%s1031_s5] sm:$0xff]  ;;  %vm1101_vm1 = vcmask 261120   ;;  %s3482_s22 = scalar_lea.vmem [#allocation8], %s3111_s19  ;;  %s3483_s8 = sld [smem:[#allocation47_spill]]  ;;  %vm1190_vm2 = vcmask 64512  }
  0x92   : > { %v2160_v2 = vld [vmem:[%s1036_s3 + $0x8] sm:$0xff]  ;;  %v2159_v4 = vld [vmem:[%s1036_s3] sm:$0xff]  ;;  %1111 = vmatpush.bf16.msra.mxu0 %v2158_v1  ;;  %s2748_s5 = smov 112   ;;  %s2749_s10 = smov 120   ;;  %vm1238_vm3 = vcmask 1043456  }
  0x93   : > { %1144 = vmatpush.bf16.msra.mxu1 %v2160_v2  ;;  %v2325_v7 = vld [vmem:[%s3482_s22] ss:$0 sm:$0xff]  ;;  %s2750_s20 = smov 104   ;;  %s3485_s25 = scalar_lea.vmem [#allocation6], %s3094_s9  ;;  %v2162_v35 = vld [vmem:[%s3155_s11 + $0x8] sm:$0xff] }
  0x94   : > { %v1077_v26 = vld [vmem:[%s3485_s25] sm:$0x1]  ;;  %1177 = vmatpush.bf16.msra.mxu2 %v2162_v35  ;;  %s3486_s21 = sld [smem:[#allocation49_spill]]  ;;  %s2751_s15 = smov 8  }
  0x95   : > { %v1078_v27 = vsub.f32 1.0, %v1077_v26  ;;  %v2161_v36 = vld [vmem:[%s3155_s11] sm:$0xff]  ;;  %s2752_s17 = smov 24   ;;  %s2753_s18 = smov 16  }
  0x96   : > { %1112 = vmatpush.bf16.msra.mxu0 %v2157_v3  ;;  %s3488_s30 = sld [smem:[#allocation51_spill]]  ;;  %s3491_s4 = scalar_lea.vmem [#allocation11], %s3111_s19 }
  0x97   : > { %v3190_v5 = vld [vmem:[#allocation2] sm:$0xff]  ;;  %1145 = vmatpush.bf16.msra.mxu1 %v2159_v4  ;;  %s3484_s3 = scalar_lea.vmem %s3483_s8, %s3139_s23  ;;  %v1079_v28 = vmul.f32 -1e+09, %v1078_v27  ;;  %s3496_s25 = sld [smem:[#allocation30_spill]] }
  0x98   : > { %v1080_v6 = vpack.c.bf16 %v3190_v5, %v3190_v5  ;;  %v2326_v8 = vld [vmem:[%s3484_s3] ss:$0 sm:$0xff]  ;;  %1178 = vmatpush.bf16.msra.mxu2 %v2161_v36 }
  0x99   : > { %v1188_v29 = vperm.slane %v1079_v28, 0 }
  0x9a   : > { %2085 = vmatmul.msk.bf16.vlgmr.msra.gmra.mxu0 %vm1101_vm1, %v1080_v6  ;;  %2094 = vmatmul.msk.bf16.vlgmr.msra.gmra.mxu1 %vm1101_vm1, %v1080_v6  ;;  %s3487_s1 = scalar_lea.vmem %s3486_s21, %s3139_s23 }
  0x9b   : > { %2103 = vmatmul.msk.bf16.vlgmr.msra.gmra.mxu2 %vm1101_vm1, %v1080_v6  ;;  %v2327_v54 = vld [vmem:[%s3487_s1] ss:$0 sm:$0xff] }
  0x9c   : > { %s3489_s12 = scalar_lea.vmem %s3488_s30, %s3139_s23 }
  0x9d   : > { %p2147_p13 = scmp.ne.s32.totalorder %s3496_s25, 1 }
 0x117   : > { %v1114_v9 = vpop.f32.mrf.mxu0  ;;  %v1147_v10 = vpop.f32.mrf.mxu1 }
 0x118   : > { %v1115_v11 = vadd.f32 %v2325_v7, %v1114_v9  ;;  %v1148_v12 = vadd.f32 %v2326_v8, %v1147_v10 }
 0x11a   : > { %v1184_v13 = vpack.c.bf16 %v1115_v11, %v1115_v11  ;;  %v1185_v14 = vpack.c.bf16 %v1148_v12, %v1148_v12 }
 0x11c   : > { %1329 = vrot.lane.b32.xlu1 %v1185_v14, %s2748_s5  ;;  %1259 = vrot.lane.b32.xlu0 %v1185_v14, %s2749_s10  ;;  %v1195_v15 = vsel %vm1190_vm2, %v1185_v14, 0 }
 0x11d   : > { %1327 = vrot.lane.b32.xlu2 %v1184_v13, %s2748_s5  ;;  %1204 = vmatpush.bf16.xpose.msra.mxu3 %v1195_v15 }
 0x11e   : > { %v1180_v55 = vpop.f32.mrf.mxu2 }
 0x11f   : > { %v1116_v16 = vpop.f32.mrf.mxu0  ;;  %v1149_v17 = vpop.f32.mrf.mxu1  ;;  %v1181_v57 = vadd.f32 %v2327_v54, %v1180_v55 }
 0x121   : > { %v1186_v60 = vpack.c.bf16 %v1181_v57, %v1181_v57 }
 0x123   : > { %v1240_v61 = vsel %vm1238_vm3, %v1186_v60, 0 }
 0x124   : > { %1398 = vrot.lane.b32.xlu1 %v1185_v14, %s2750_s20  ;;  %1256 = vrot.lane.b32.xlu0 %v1184_v13, %s2749_s10 }
 0x125   : > { %1396 = vrot.lane.b32.xlu2 %v1184_v13, %s2750_s20  ;;  %2104 = vmatmul.msk.bf16.vlgmr.msra.gmra.mxu3 %vm1190_vm2, %v1184_v13 }
 0x126   : > { %v1182_v62 = vpop.f32.mrf.mxu2  ;;  %1249 = vmatpush.bf16.msrb.mxu0 %v1240_v61 }
 0x177   : > { %v1328_v22 = vpop.permute.xlu2 %1327 }
 0x17f   : > { %v1397_v30 = vpop.permute.xlu2 %1396 }
 0x18e   : > { %v1330_v18 = vpop.permute.xlu1 %1329  ;;  %v1260_v19 = vpop.permute.xlu0 %1259 }
 0x18f   : > { %v1265_v20 = vsel %vm1190_vm2, %v1260_v19, 0  ;;  %v1335_v21 = vsel %vm1190_vm2, %v1330_v18, 0 }
 0x190   : > { %1274 = vmatpush.bf16.xpose.msrb.mxu1 %v1265_v20  ;;  %1344 = vmatpush.bf16.xpose.msrb.mxu3 %v1335_v21 }
 0x196   : > { %v1399_v23 = vpop.permute.xlu1 %1398  ;;  %v1257_v24 = vpop.permute.xlu0 %1256 }
 0x197   : > { %v1404_v25 = vsel %vm1190_vm2, %v1399_v23, 0  ;;  %2106 = vmatmul.msk.bf16.vlgmr.msrb.gmra.mxu1 %vm1190_vm2, %v1257_v24  ;;  %2108 = vmatmul.msk.bf16.vlgmr.msrb.gmra.mxu3 %vm1190_vm2, %v1328_v22 }
 0x198   : > { %1413 = vmatpush.bf16.xpose.msra.mxu1 %v1404_v25 }
 0x1a7   : > { %2110 = vmatmul.msk.bf16.vlgmr.msra.gmra.mxu1 %vm1190_vm2, %v1397_v30 }
 0x1a8   : > { %v1206_v31 = vpop.f32.mrf.mxu3 }
 0x1a9   : > { %v1207_v32 = vadd.f32 %v1206_v31, %v1188_v29 }
 0x1ab   : > { %v1210_v33 = vsel %vm1190_vm2, %v1207_v32, -inf }
 0x1ac   : > { %1211 = vmax.xlane.f32.xlu1 %v1210_v33 }
 0x1b0   : > { %v1208_v34 = vpop.f32.mrf.mxu3 }
 0x214   : > { %v1276_v37 = vpop.f32.mrf.mxu1 }
 0x215   : > { %v1277_v38 = vadd.f32 %v1276_v37, %v1188_v29 }
 0x217   : > { %v1280_v39 = vsel %vm1190_vm2, %v1277_v38, -inf }
 0x218   : > { %1281 = vmax.xlane.f32.xlu0 %v1280_v39 }
 0x21a   : > { %v1346_v40 = vpop.f32.mrf.mxu3 }
 0x21b   : > { %v1347_v50 = vadd.f32 %v1346_v40, %v1188_v29 }
 0x21c   : > { %v1278_v41 = vpop.f32.mrf.mxu1 }
 0x21d   : > { %v1350_v53 = vsel %vm1190_vm2, %v1347_v50, -inf }
 0x21f   : > { %v1212_v42 = vpop.xlane.xlu1 %1211 }
 0x220   : > { %v1213_v43 = vsub.f32 %v1207_v32, %v1212_v42 }
 0x222   : > { %v1214_v44 = vmul.f32 1.442695, %v1213_v43  ;;  %v1348_v45 = vpop.f32.mrf.mxu3 }
 0x224   : > { %2335 = vpow2.f32 %v1214_v44  ;;  %v1415_v46 = vpop.f32.mrf.mxu1 }
 0x225   : > { %v1416_v47 = vadd.f32 %v1415_v46, %v1188_v29 }
 0x227   : > { %v1419_v48 = vsel %vm1190_vm2, %v1416_v47, -inf }
 0x228   : > { %1420 = vmax.xlane.f32.xlu2 %v1419_v48 }
 0x22a   : > { %v2336_v49 = vpop.eup %2335 }
 0x22b   : > { %v1216_v51 = vsel %vm1190_vm2, %v2336_v49, 0.0 }
 0x22c   : > { %1217 = vadd.xlane.f32.xlu1 %v1216_v51  ;;  %v1417_v52 = vpop.f32.mrf.mxu1 }
 0x230   : > { %1351 = vmax.xlane.f32.xlu2 %v1350_v53 }
 0x28b   : > { %v1282_v56 = vpop.xlane.xlu0 %1281 }
 0x28c   : > { %v1283_v58 = vsub.f32 %v1277_v38, %v1282_v56 }
 0x28e   : > { %v1284_v59 = vmul.f32 1.442695, %v1283_v58 }
 0x290   : > { %2337 = vpow2.f32 %v1284_v59 }
 0x296   : > { %v2338_v63 = vpop.eup %2337 }
 0x297   : > { %v1286_v0 = vsel %vm1190_vm2, %v2338_v63, 0.0 }
 0x298   : > { %1287 = vadd.xlane.f32.xlu0 %v1286_v0 }
 0x29b   : > { %v1421_v1 = vpop.xlane.xlu2 %1420 }
 0x29c   : > { %v1422_v2 = vsub.f32 %v1416_v47, %v1421_v1 }
 0x29e   : > { %v1423_v3 = vmul.f32 1.442695, %v1422_v2 }
 0x29f   : > { %v1218_v4 = vpop.xlane.xlu1 %1217 }
 0x2a0   : > { %2339 = vpow2.f32 %v1423_v3  ;;  %v1230_v14 = vand.u32 2147483648, %v1218_v4  ;;  %v1228_v16 = vand.u32 2147483647, %v1218_v4  ;;  %vm1224_vm5 = vweird.f32 %v1218_v4 }
 0x2a1   : > { %2341 = vrcp.f32 %v1218_v4 }
 0x2a2   : > { %v1231_v19 = vor.u32 1.1754944e-38, %v1230_v14  ;;  %vm1229_vm7 = vcmp.eq.f32.partialorder %v1228_v16, 8.507059e+37  ;;  %v2163_v16 = vld [vmem:[%s3119_s14] sm:$0xff] }
 0x2a3   : > { %v1352_v6 = vpop.xlane.xlu2 %1351 }
 0x2a4   : > { %v1353_v7 = vsub.f32 %v1347_v50, %v1352_v6 }
 0x2a6   : > { %v3234_v8 = vpop.eup %2339  ;;  %v1354_v9 = vmul.f32 1.442695, %v1353_v7 }
 0x2a7   : > { %v2342_v10 = vpop.eup %2341  ;;  %v1425_v11 = vsel %vm1190_vm2, %v3234_v8, 0.0 }
 0x2a8   : > { %v1220_v12 = vmul.f32 %v2342_v10, %v1218_v4  ;;  %2343 = vpow2.f32 %v1354_v9  ;;  %1426 = vadd.xlane.f32.xlu2 %v1425_v11  ;;  %vm1225_vm4 = vweird.f32 %v2342_v10 }
 0x2a9   : > { %vm1226_vm6 = vmor %vm1224_vm5, %vm1225_vm4 }
 0x2aa   : > { %v1221_v13 = vsub.f32 1.0, %v1220_v12 }
 0x2ac   : > { %v1222_v15 = vmul.f32 %v2342_v10, %v1221_v13  ;;  %1306 = vrot.lane.b32.xlu0 %v1186_v60, %s2749_s10 }
 0x2ae   : > { %v3239_v17 = vpop.eup %2343  ;;  %v1223_v18 = vadd.f32 %v2342_v10, %v1222_v15  ;;  %v2164_v15 = vld [vmem:[%s3119_s14 + $0x8] sm:$0xff] }
 0x2af   : > { %v1356_v20 = vsel %vm1190_vm2, %v3239_v17, 0.0  ;;  %1512 = vmatpush.bf16.msra.mxu3 %v2164_v15 }
 0x2b0   : > { %1357 = vadd.xlane.f32.xlu1 %v1356_v20  ;;  %v1227_v21 = vsel %vm1226_vm6, %v2342_v10, %v1223_v18 }
 0x2b1   : > { %v1232_v22 = vsel %vm1229_vm7, %v1231_v19, %v1227_v21  ;;  %vm1480_vm7 = vcmask 195584  }
 0x2b2   : > { %v1233_v23 = vmul.f32 %v2336_v49, %v1232_v22 }
 0x2b3   : > { %1513 = vmatpush.bf16.msra.mxu3 %v2163_v16 }
 0x2b4   : > { %v1234_v24 = vpack.c.bf16 %v1233_v23, %v1233_v23 }
 0x2b6   : > { %2105 = vmatmul.msk.bf16.vlgmr.msrb.gmra.mxu0 %vm1190_vm2, %v1234_v24  ;;  %v2328_v24 = vld [vmem:[%s3489_s12] ss:$0 sm:$0xff] }
 0x2c0   : > { %1444 = vrot.lane.b32.xlu2 %v1186_v60, %s2750_s20  ;;  %s3495_s20 = scalar_lea.vmem [#allocation14], %s3111_s19 }
 0x2c9   : > { %1375 = vrot.lane.b32.xlu1 %v1186_v60, %s2748_s5 }
 0x30b   : > { %v1288_v25 = vpop.xlane.xlu0 %1287 }
 0x30c   : > { %2345 = vrcp.f32 %v1288_v25  ;;  %v1300_v30 = vand.u32 2147483648, %v1288_v25  ;;  %v1298_v31 = vand.u32 2147483647, %v1288_v25  ;;  %vm1294_vm9 = vweird.f32 %v1288_v25 }
 0x30e   : > { %v1301_v33 = vor.u32 1.1754944e-38, %v1300_v30  ;;  %vm1299_vm11 = vcmp.eq.f32.partialorder %v1298_v31, 8.507059e+37  ;;  %v2754_v30 = vmov 32.0  }
 0x312   : > { %v2346_v26 = vpop.eup %2345 }
 0x313   : > { %v1290_v27 = vmul.f32 %v2346_v26, %v1288_v25  ;;  %vm1295_vm8 = vweird.f32 %v2346_v26 }
 0x314   : > { %vm1296_vm10 = vmor %vm1294_vm9, %vm1295_vm8 }
 0x315   : > { %v1291_v28 = vsub.f32 1.0, %v1290_v27 }
 0x317   : > { %v1292_v29 = vmul.f32 %v2346_v26, %v1291_v28 }
 0x319   : > { %v1293_v32 = vadd.f32 %v2346_v26, %v1292_v29 }
 0x31b   : > { %v1427_v34 = vpop.xlane.xlu2 %1426  ;;  %v1297_v35 = vsel %vm1296_vm10, %v2346_v26, %v1293_v32 }
 0x31c   : > { %2347 = vrcp.f32 %v1427_v34  ;;  %v1302_v36 = vsel %vm1299_vm11, %v1301_v33, %v1297_v35  ;;  %v1439_v47 = vand.u32 2147483648, %v1427_v34  ;;  %v1437_v49 = vand.u32 2147483647, %v1427_v34 }
 0x31d   : > { %v1303_v38 = vmul.f32 %v2338_v63, %v1302_v36  ;;  %vm1433_vm13 = vweird.f32 %v1427_v34  ;;  %vm1642_vm11 = vcmask 523264  }
 0x31e   : > { %v1307_v37 = vpop.permute.xlu0 %1306  ;;  %v1440_v52 = vor.u32 1.1754944e-38, %v1439_v47  ;;  %vm1438_vm15 = vcmp.eq.f32.partialorder %v1437_v49, 8.507059e+37 }
 0x31f   : > { %v1312_v39 = vsel %vm1238_vm3, %v1307_v37, 0  ;;  %v1304_v40 = vpack.c.bf16 %v1303_v38, %v1303_v38 }
 0x320   : > { %1321 = vmatpush.bf16.msrb.mxu2 %v1312_v39 }
 0x322   : > { %v2348_v41 = vpop.eup %2347 }
 0x323   : > { %v1429_v42 = vmul.f32 %v2348_v41, %v1427_v34  ;;  %2107 = vmatmul.msk.bf16.vlgmr.msrb.gmra.mxu2 %vm1190_vm2, %v1304_v40  ;;  %v1445_v43 = vpop.permute.xlu2 %1444  ;;  %v1358_v44 = vpop.xlane.xlu1 %1357  ;;  %vm1434_vm12 = vweird.f32 %v2348_v41 }
 0x324   : > { %v1450_v45 = vsel %vm1238_vm3, %v1445_v43, 0  ;;  %2349 = vrcp.f32 %v1358_v44  ;;  %vm1435_vm14 = vmor %vm1433_vm13, %vm1434_vm12  ;;  %v1370_v60 = vand.u32 2147483648, %v1358_v44  ;;  %vm1364_vm4 = vweird.f32 %v1358_v44 }
 0x325   : > { %v1430_v46 = vsub.f32 1.0, %v1429_v42  ;;  %1459 = vmatpush.bf16.msra.mxu2 %v1450_v45  ;;  %v1368_v62 = vand.u32 2147483647, %v1358_v44  ;;  %2351 = vrcp.f32 %v2754_v30  ;;  %v2165_v42 = vld [vmem:[%s3126_s24] sm:$0xff] }
 0x326   : > { %v1371_v1 = vor.u32 1.1754944e-38, %v1370_v60  ;;  %v2169_v60 = vld [vmem:[%s3177_s16 + $0x10] sm:$0xff] }
 0x327   : > { %v1431_v48 = vmul.f32 %v2348_v41, %v1430_v46  ;;  %vm1369_vm6 = vcmp.eq.f32.partialorder %v1368_v62, 8.507059e+37  ;;  %v2167_v62 = vld [vmem:[%s3177_s16] sm:$0xff] }
 0x329   : > { %v1432_v50 = vadd.f32 %v2348_v41, %v1431_v48 }
 0x32a   : > { %v2350_v51 = vpop.eup %2349 }
 0x32b   : > { %v1436_v53 = vsel %vm1435_vm14, %v2348_v41, %v1432_v50  ;;  %v1360_v54 = vmul.f32 %v2350_v51, %v1358_v44  ;;  %vm1365_vm0 = vweird.f32 %v2350_v51  ;;  %v2352_v31 = vpop.eup %2351  ;;  %v2166_v41 = vld [vmem:[%s3126_s24 + $0x8] sm:$0xff] }
 0x32c   : > { %v1441_v55 = vsel %vm1438_vm15, %v1440_v52, %v1436_v53  ;;  %vm1366_vm5 = vmor %vm1364_vm4, %vm1365_vm0  ;;  %v1526_v32 = vmul.f32 32.0, %v2352_v31  ;;  %v2329_v52 = vld [vmem:[%s1053_s26] ss:$0 sm:$0xff] }
 0x32d   : > { %v1442_v56 = vmul.f32 %v3234_v8, %v1441_v55  ;;  %v1361_v57 = vsub.f32 1.0, %v1360_v54  ;;  %v2330_v54 = vld [vmem:[%s3491_s4] ss:$0 sm:$0xff] }
 0x32e   : > { %v1527_v33 = vsub.f32 1.0, %v1526_v32 }
 0x32f   : > { %v1362_v58 = vmul.f32 %v2350_v51, %v1361_v57  ;;  %v1443_v61 = vpack.c.bf16 %v1442_v56, %v1442_v56 }
 0x330   : > { %v1528_v34 = vmul.f32 %v2352_v31, %v1527_v33 }
 0x331   : > { %v1363_v59 = vadd.f32 %v2350_v51, %v1362_v58 }
 0x332   : > { %v1529_v35 = vadd.f32 %v2352_v31, %v1528_v34  ;;  %v2333_v34 = vld [vmem:[%s1067_s29] ss:$0 sm:$0xff]  ;;  %s3497_s29 = sld [smem:[#allocation61_spill]] (!%p2147_p13) }
 0x333   : > { %v1251_v63 = vpop.f32.mrf.mxu0  ;;  %2111 = vmatmul.msk.bf16.vlgmr.msra.gmra.mxu2 %vm1190_vm2, %v1443_v61  ;;  %v1367_v0 = vsel %vm1366_vm5, %v2350_v51, %v1363_v59  ;;  %v2170_v59 = vld [vmem:[%s3177_s16 + $0x18] sm:$0xff]  ;;  %v2168_v61 = vld [vmem:[%s3177_s16 + $0x8] sm:$0xff] }
 0x334   : > { %v1372_v2 = vsel %vm1369_vm6, %v1371_v1, %v1367_v0  ;;  %1650 = vmatpush.bf16.msrb.mxu1 %v2170_v59 }
 0x335   : > { %v1373_v3 = vmul.f32 %v3239_v17, %v1372_v2 }
 0x337   : > { %v1374_v8 = vpack.c.bf16 %v1373_v3, %v1373_v3 }
 0x338   : > { %1651 = vmatpush.bf16.msrb.mxu1 %v2169_v60 }
 0x33b   : > { %v1253_v4 = vpop.f32.mrf.mxu0  ;;  %v1376_v6 = vpop.permute.xlu1 %1375 }
 0x33c   : > { %v1381_v7 = vsel %vm1238_vm3, %v1376_v6, 0  ;;  %vm1478_vm3 = vcmask 130048   ;;  %1652 = vmatpush.bf16.msrb.mxu1 %v2168_v61 }
 0x33d   : > { %1390 = vmatpush.bf16.msra.mxu0 %v1381_v7 }
 0x340   : > { %2109 = vmatmul.msk.bf16.vlgmr.msra.gmra.mxu0 %vm1190_vm2, %v1374_v8  ;;  %1653 = vmatpush.bf16.msrb.mxu1 %v2167_v62 }
 0x341   : > { %1589 = vmatpush.bf16.msrb.mxu0 %v2166_v41 }
 0x345   : > { %1590 = vmatpush.bf16.msrb.mxu0 %v2165_v42 }
 0x3a6   : > { %v1323_v9 = vpop.f32.mrf.mxu2 }
 0x3a7   : > { %1466 = vrot.lane.b32.xlu0 %v1323_v9, %s2751_s15 }
 0x3ae   : > { %v1325_v10 = vpop.f32.mrf.mxu2 }
 0x3b6   : > { %v1461_v11 = vpop.f32.mrf.mxu2 }
 0x3b7   : > { %1474 = vrot.lane.b32.xlu2 %v1461_v11, %s2752_s17 }
 0x3bd   : > { %v1392_v12 = vpop.f32.mrf.mxu0 }
 0x3be   : > { %v1463_v13 = vpop.f32.mrf.mxu2  ;;  %1470 = vrot.lane.b32.xlu0 %v1392_v12, %s2753_s18 }
 0x3c5   : > { %v1394_v14 = vpop.f32.mrf.mxu0 }
 0x3c6   : > { %v2332_v14 = vld [vmem:[%s1064_s27] ss:$0 sm:$0xff] }
 0x411   : > { %v1475_v20 = vpop.permute.xlu2 %1474 }
 0x419   : > { %v1467_v17 = vpop.permute.xlu0 %1466 }
 0x41a   : > { %v1477_v18 = vsel %vm1190_vm2, %v1251_v63, %v1467_v17  ;;  %vm1530_vm2 = vweird.f32 %v2352_v31  ;;  %v2331_v63 = vld [vmem:[%s1056_s6] ss:$0 sm:$0xff] }
 0x41b   : > { %v3265_v36 = vsel %vm1530_vm2, %v2352_v31, %v1529_v35 }
 0x430   : > { %v1471_v19 = vpop.permute.xlu0 %1470 }
 0x431   : > { %v1479_v21 = vsel %vm1478_vm3, %v1477_v18, %v1471_v19 }
 0x432   : > { %v1481_v22 = vsel %vm1480_vm7, %v1479_v21, %v1475_v20 }
 0x433   : > { %v1482_v23 = vpack.c.bf16 %v1481_v22, %v1481_v22 }
 0x435   : > { %2120 = vmatmul.msk.bf16.vlgmr.msra.gmra.mxu3 %vm1101_vm1, %v1482_v23 }
 0x4b8   : > { %v1515_v25 = vpop.f32.mrf.mxu3 }
 0x4b9   : > { %v1516_v26 = vadd.f32 %v2328_v24, %v1515_v25 }
 0x4bb   : > { %v1519_v27 = vadd.f32 %v1516_v26, %v3190_v5 }
 0x4bd   : > { %v1522_v28 = vsel %vm1101_vm1, %v1519_v27, 0.0 }
 0x4be   : > { %1523 = vadd.xlane.f32.xlu1 %v1522_v28 }
 0x4c0   : > { %v1517_v29 = vpop.f32.mrf.mxu3 }
 0x531   : > { %v1524_v37 = vpop.xlane.xlu1 %1523 }
 0x532   : > { %v1532_v38 = vmul.f32 %v3265_v36, %v1524_v37  ;;  %v2334_v37 = vld [vmem:[%s3495_s20] ss:$0 sm:$0xff] }
 0x534   : > { %v1533_v5 = vsub.f32 %v1519_v27, %v1532_v38 }
 0x536   : > { %v1534_v39 = vmul.f32 %v1533_v5, %v1533_v5 }
 0x538   : > { %v1535_v40 = vsel %vm1101_vm1, %v1534_v39, 0.0 }
 0x539   : > { %1536 = vadd.xlane.f32.xlu0 %v1535_v40 }
 0x5ac   : > { %v1537_v43 = vpop.xlane.xlu0 %1536 }
 0x5ad   : > { %v1538_v44 = vmul.f32 %v1537_v43, %v3265_v36 }
 0x5af   : > { %v1539_v45 = vadd.f32 1e-12, %v1538_v44 }
 0x5b1   : > { %2353 = vrsqrt.f32 %v1539_v45  ;;  %vm1546_vm9 = vweird.f32 %v1539_v45 }
 0x5b7   : > { %v2354_v46 = vpop.eup %2353 }
 0x5b8   : > { %v1541_v47 = vmul.f32 %v2354_v46, %v1539_v45  ;;  %vm1547_vm8 = vweird.f32 %v2354_v46 }
 0x5b9   : > { %vm1548_vm10 = vmor %vm1546_vm9, %vm1547_vm8 }
 0x5ba   : > { %v1542_v48 = vmul.f32 %v2354_v46, %v1541_v47 }
 0x5bc   : > { %v1543_v49 = vmul.f32 0.5, %v1542_v48 }
 0x5be   : > { %v1544_v50 = vsub.f32 1.5, %v1543_v49 }
 0x5c0   : > { %v1545_v51 = vmul.f32 %v2354_v46, %v1544_v50 }
 0x5c2   : > { %v1549_v53 = vsel %vm1548_vm10, %v2354_v46, %v1545_v51 }
 0x5c3   : > { %v1550_v55 = vmul.f32 %v1549_v53, %v1533_v5 }
 0x5c5   : > { %v1554_v56 = vmul.f32 %v2329_v52, %v1550_v55 }
 0x5c7   : > { %v1558_v57 = vadd.f32 %v2330_v54, %v1554_v56 }
 0x5c9   : > { %v1559_v58 = vpack.c.bf16 %v1558_v57, %v1558_v57 }
 0x5cb   : > { %2129 = vmatmul.msk.bf16.vlgmr.msrb.gmra.mxu0 %vm1101_vm1, %v1559_v58 }
 0x648   : > { %v1592_v0 = vpop.f32.mrf.mxu0 }
 0x649   : > { %v1593_v1 = vadd.f32 %v2331_v63, %v1592_v0 }
 0x64b   : > { %v1597_v2 = vmul.f32 0.044715, %v1593_v1  ;;  %v1596_v10 = vmul.f32 0.5, %v1593_v1 }
 0x64d   : > { %v1598_v3 = vmul.f32 %v1597_v2, %v1593_v1 }
 0x64f   : > { %v1599_v4 = vmul.f32 %v1598_v3, %v1593_v1 }
 0x650   : > { %v1594_v6 = vpop.f32.mrf.mxu0 }
 0x651   : > { %v1600_v7 = vadd.f32 %v1599_v4, %v1593_v1 }
 0x653   : > { %v1601_v8 = vmul.f32 0.7978846, %v1600_v7 }
 0x655   : > { %2355 = vtanh.f32 %v1601_v8 }
 0x65b   : > { %v2356_v9 = vpop.eup %2355 }
 0x65c   : > { %v1603_v11 = vadd.f32 1.0, %v2356_v9 }
 0x65e   : > { %v1604_v12 = vmul.f32 %v1603_v11, %v1596_v10 }
 0x660   : > { %v1605_v13 = vpack.c.bf16 %v1604_v12, %v1604_v12 }
 0x662   : > { %2146 = vmatmul.msk.bf16.vlgmr.msrb.gmra.mxu1 %vm1642_vm11, %v1605_v13 }
 0x6df   : > { %v1655_v15 = vpop.f32.mrf.mxu1 }
 0x6e0   : > { %v1656_v16 = vadd.f32 %v2332_v14, %v1655_v15 }
 0x6e2   : > { %v1659_v17 = vadd.f32 %v1656_v16, %v1558_v57 }
 0x6e4   : > { %v1662_v18 = vsel %vm1101_vm1, %v1659_v17, 0.0 }
 0x6e5   : > { %1663 = vadd.xlane.f32.xlu2 %v1662_v18 }
 0x6e7   : > { %v1657_v19 = vpop.f32.mrf.mxu1 }
 0x758   : > { %v1664_v20 = vpop.xlane.xlu2 %1663 }
 0x759   : > { %v1665_v21 = vmul.f32 %v1664_v20, %v3265_v36 }
 0x75b   : > { %v1666_v22 = vsub.f32 %v1659_v17, %v1665_v21 }
 0x75d   : > { %v1667_v23 = vmul.f32 %v1666_v22, %v1666_v22 }
 0x75f   : > { %v1668_v24 = vsel %vm1101_vm1, %v1667_v23, 0.0 }
 0x760   : > { %1669 = vadd.xlane.f32.xlu1 %v1668_v24 }
 0x7d3   : > { %v1670_v25 = vpop.xlane.xlu1 %1669 }
 0x7d4   : > { %v1671_v26 = vmul.f32 %v1670_v25, %v3265_v36 }
 0x7d6   : > { %v1672_v27 = vadd.f32 1e-12, %v1671_v26 }
 0x7d8   : > { %2357 = vrsqrt.f32 %v1672_v27  ;;  %vm1679_vm13 = vweird.f32 %v1672_v27 }
 0x7de   : > { %v2358_v28 = vpop.eup %2357 }
 0x7df   : > { %v1674_v29 = vmul.f32 %v2358_v28, %v1672_v27  ;;  %vm1680_vm12 = vweird.f32 %v2358_v28 }
 0x7e0   : > { %vm1681_vm14 = vmor %vm1679_vm13, %vm1680_vm12 }
 0x7e1   : > { %v1675_v30 = vmul.f32 %v2358_v28, %v1674_v29 }
 0x7e3   : > { %v1676_v31 = vmul.f32 0.5, %v1675_v30 }
 0x7e5   : > { %v1677_v32 = vsub.f32 1.5, %v1676_v31 }
 0x7e7   : > { %v1678_v33 = vmul.f32 %v2358_v28, %v1677_v32 }
 0x7e9   : > { %v1682_v35 = vsel %vm1681_vm14, %v2358_v28, %v1678_v33 }
 0x7ea   : > { %v1683_v36 = vmul.f32 %v1682_v35, %v1666_v22 }
 0x7ec   : > { %v1687_v38 = vmul.f32 %v2333_v34, %v1683_v36  ;;  %1696 = sbr.rel (%p2147_p13) target bundleno = 2170 (0x87a), region = 140 }
 0x7ee   : > { %v1691_v5 = vadd.f32 %v2334_v37, %v1687_v38 }
 0x7f0   : > { %1692 = vst.msk [vmem:[#allocation2] sm:$0xff] %vm1101_vm1, %v1691_v5 }
 0x7f1   : > { %v1700_v39 = vld [vmem:[#allocation15 + $0x18] sm:$0xff]  ;;  %v1699_v40 = vld [vmem:[#allocation15 + $0x10] sm:$0xff]  ;;  %v1698_v41 = vld [vmem:[#allocation15 + $0x8] sm:$0xff] }
 0x7f2   : > { %1717 = vmatpush.msra.mxu0 %v1700_v39  ;;  %v1697_v42 = vld [vmem:[#allocation15] sm:$0xff] }
 0x7f3   : > { %v1701_v43 = vld [vmem:[%s3497_s29] sm:$0x1] }
 0x7f4   : > { %1718 = vmatpush.msra.mxu0 %v1699_v40 }
 0x7f6   : > { %1719 = vmatpush.msra.mxu0 %v1698_v41 }
 0x7f8   : > { %1720 = vmatpush.msra.mxu0 %v1697_v42 }
 0x7f9   : > { %2148 = vmatmul.msk.f32.vlgmr.msra.gmra.mxu0 %vm1101_vm1, %v1691_v5 }
 0x876   : > { %v1722_v44 = vpop.f32.mrf.mxu0 }
 0x877   : > { %v1723_v45 = vadd.f32 %v1722_v44, %v1701_v43 }
 0x879   : > { %1725 = vst [vmem:[%s1026_s0] sm:$0x1] %v1723_v45 }
 0x87a PF: > { %s3498_s11 = sld [smem:[#allocation31_spill]]  ;;  %s1737_s28 = sshll.u32 %s1026_s0, 4  ;;  %s1738_s28 = int_to_ptr.vmem [resolvable:$true] %s1737_s28 }
 0x87b   : > { %s3499_s1 = sld [smem:[#allocation62_spill]]  ;;  %s1727_s30 = scalar_lea.sflag [#allocation5], %s3094_s9 }
 0x881   : > { %s3500_s15 = smov %s3499_s1  ;;  %s1735_s18 = scalar_lea.hbm %s3499_s1, %s3498_s11 }
 0x882   : > { %s1739_s2 = sshll.u32 %s1735_s18, 4  ;;  %s2619_s4 = scalar_lea.hbm %s3500_s15, 2  ;;  %s1740_s2 = int_to_ptr.hbm [resolvable:$true] %s1739_s2 }
 0x883   : > { %s2613_s12 = sshra.s32 %s1740_s2, 4  ;;  %s2614_s12 = int_to_ptr.hbm [resolvable:$true] %s2613_s12 }
 0x884   : > { %s2615_s14 = scalar_lea.hbm %s2614_s12, 1  ;;  %p2620_p1 = scmp.lt.s32.totalorder %s2614_s12, %s3500_s15 }
 0x885   : > { %p2616_p8 = scmp.ne.s32.totalorder %s2614_s12, %s2615_s14  ;;  %p2621_p3 = scmp.lt.s32.totalorder %s2619_s4, %s2615_s14 }
 0x887   : > { %p2617_p2 = pnand %p2616_p8, %p2982_p4  ;;  %p2622_p11 = por %p2621_p3, %p2620_p1 }
 0x889   : > { %p2618_p9 = pneg %p2617_p2 }
 0x88b   : > { %p2623_p12 = pnand %p2622_p11, %p2618_p9 }
 0x88d   : > { %2626 = shalt.err (!%p2623_p12)
}
 0x88e   : > { %2189 = dma.vmem_to_hbm [thread:$0]  (%p2982_p4), %s1738_s28, 16, %s1740_s2, %s1727_s30  }
 0x88f PF: > { %s3502_s9 = sld [smem:[#allocation34_spill]] }
 0x890   : > { %s3503_s0 = sld [smem:[#allocation27_spill]] }
 0x895   : > { %p2224_p0 = scmp.ge.s32.totalorder %s3502_s9, 2 }
 0x896   : > { %s1751_s16 = sand.u32 1, %s3503_s0  }
 0x897   : > { %p2218_p5 = pnand %p2224_p0, %p2989_p10  ;;  %s1752_s3 = scalar_lea.sflag [#allocation5], %s1751_s16 }
 0x899   : > { %p2219_p7 = pneg %p2218_p5 }
 0x89b   : > { %2696 = dma.done.wait (%p2219_p7), %s1752_s3, 16  }
 0x89c   : > { %2698 = vsyncadd (%p2219_p7), %s1752_s3, 4294967280  ;;  %s46_s4 = sadd.s32 1, %s3502_s9   ;;  %s3505_s1 = sld [smem:[#allocation25_spill]] }
 0x89d   : > { %p43_p6 = scmp.ge.s32.totalorder %s46_s4, 6   ;;  %s3506_s22 = sld [smem:[#allocation26_spill]] }
 0x89e   : > { %s3507_s23 = sld [smem:[#allocation37_spill]] }
 0x89f   : > { %s3508_s24 = sld [smem:[#allocation28_spill]] }
 0x8a0   : > { %s3509_s2 = sld [smem:[#allocation29_spill]] }
 0x8a1   : > { %s3510_s25 = sld [smem:[#allocation38_spill]]  ;;  %45 = sbr.rel (!%p43_p6) target bundleno = 38 (0x26), region = 262 }
 0x8a2   : > { %s3511_s3 = sld [smem:[#allocation32_spill]] }
 0x8a3   : > { %s3512_s26 = sld [smem:[#allocation33_spill]] }
 0x8a4   : > { %s3513_s27 = sld [smem:[#allocation35_spill]] }
 0x8a5   : > { %s3514_s28 = sld [smem:[#allocation36_spill]] }
 0x8a6   :  { %1757 = vsyncpa [#allocation4], 1 }
 0x8a7   :  { %1759 = vsyncpa [#allocation4 + $0x1], 1 }
 0x8a8   :  { %1760 = vsyncpa [#allocation7], 1 }
 0x8a9   :  { %1762 = vsyncpa [#allocation7 + $0x1], 1 }
 0x8aa   :  { %1763 = vsyncpa [#allocation10], 1 }
 0x8ab   :  { %1765 = vsyncpa [#allocation10 + $0x1], 1 }
 0x8ac   :  { %1766 = vsyncpa [#allocation13], 1 }
 0x8ad   :  { %1768 = vsyncpa [#allocation13 + $0x1], 1 }
 0x8ae   :  { %1769 = vsyncpa [#allocation16], 1 }
 0x8af   :  { %1770 = vsyncpa [#allocation5], 1 }
 0x8b0   :  { %1772 = vsyncpa [#allocation5 + $0x1], 1 }

</bundles_post_ra>
